<compile_context>
chip_gen: v7x
topology: tpu7x:2x2x1
jax: 0.10.0
libtpu: 0.0.40
codegen_flags: <defaults>
</compile_context>

<pallas_src>
import numpy as np
import jax
import jax.numpy as jnp
from jax.experimental import pallas as pl
from jax.experimental.pallas import tpu as pltpu


# ----------------------------------------------------------------------------
# host-side helper: horizontally banded conv weight
#   w: (3, 3, Cin, Cout)  ->  (3, W*Cin, W*Cout)
#   band[dy][v*Cin+ci, x*Cout+co] = w[dy, dx, ci, co] with v = x+dx-1 (0<=dx<3),
#   out-of-range taps dropped (== horizontal zero padding).
# ----------------------------------------------------------------------------
def _band(w, W):
    kH, kW, Cin, Cout = w.shape
    A = np.zeros((kH, W * Cin, W * Cout), np.float32)
    for dy in range(kH):
        for dx in range(kW):
            for x in range(W):
                v = x + dx - 1
                if 0 <= v < W:
                    A[dy, v * Cin:(v + 1) * Cin, x * Cout:(x + 1) * Cout] = w[dy, dx]
    return A


# ----------------------------------------------------------------------------
# kernel 1: zero-pad(H) + conv3x3 (BN scale folded into weights) + bias + ReLU
#           emits the a-half (f32) and b-half (bf16) as two lane-dense outputs.
# ----------------------------------------------------------------------------
def _conv_bn_relu_kernel(x_ref, w_ref, bias_ref, oa_ref, ob_ref, pad_ref):
    # x_ref : (tile_n, H, W*Cin)  bf16        w_ref  : (3, W*Cin, 2*W*C) bf16
    # bias  : (1, 2*W*C) f32                  oa_ref : (tile_n, H, W*C) f32
    # ob_ref: (tile_n, H, W*C) bf16           pad_ref: (tile_n, H+2, W*Cin) bf16
    tile_n, H, WCin = x_ref.shape
    WC = oa_ref.shape[-1]
    M = tile_n * H

    # zero only the two H-border rows (every step: safe under megacore sharding)
    zrow = jnp.zeros((tile_n, 1, WCin), jnp.bfloat16)
    pad_ref[:, 0:1, :] = zrow
    pad_ref[:, H + 1:H + 2, :] = zrow
    pad_ref[:, 1:H + 1, :] = x_ref[...]

    y = None
    for dy in range(3):
        slab = pad_ref[:, dy:dy + H, :].reshape(M, WCin)           # lane-dense
        part = jnp.dot(slab, w_ref[dy], preferred_element_type=jnp.float32)
        y = part if y is None else y + part
    y = jnp.maximum(y + bias_ref[0], 0.0)                           # (M, 2*W*C)

    oa_ref[...] = y[:, :WC].reshape(tile_n, H, WC)
    ob_ref[...] = y[:, WC:].reshape(tile_n, H, WC).astype(jnp.bfloat16)


def _pick_tile_n(N, H, WCin, WCout):
    # rough per-frame VMEM bytes (bf16 in + pad, f32+bf16 outs, f32 gate temp)
    per_frame = H * WCin * 2 * 2 + (H + 2) * WCin * 2 + H * WCout * (4 + 2 + 4)
    budget = 2 << 20
    cap = max(1, min(N, budget // max(per_frame, 1)))
    if N > 1:
        cap = min(cap, max(1, N // 2))   # keep >=2 grid steps (pipelining / megacore)
    for t in range(cap, 0, -1):
        if N % t == 0:
            return t
    return 1


def conv_bn_relu(x_ld, w_band, bias_dense):
    # x_ld: (N, H, W*Cin) bf16 -> (a (N,H,W*C) f32, b (N,H,W*C) bf16)
    N, H, WCin = x_ld.shape
    WC = w_band.shape[-1] // 2
    tile_n = _pick_tile_n(N, H, WCin, 2 * WC)
    return pl.pallas_call(
        _conv_bn_relu_kernel,
        out_shape=(jax.ShapeDtypeStruct((N, H, WC), jnp.float32),
                   jax.ShapeDtypeStruct((N, H, WC), jnp.bfloat16)),
        grid=(N // tile_n,),
        in_specs=[
            pl.BlockSpec((tile_n, H, WCin), lambda i: (i, 0, 0)),
            pl.BlockSpec((3, WCin, 2 * WC), lambda i: (0, 0, 0)),
            pl.BlockSpec((1, 2 * WC), lambda i: (0, 0)),
        ],
        out_specs=(pl.BlockSpec((tile_n, H, WC), lambda i: (i, 0, 0)),
                   pl.BlockSpec((tile_n, H, WC), lambda i: (i, 0, 0))),
        scratch_shapes=[pltpu.VMEM((tile_n, H + 2, WCin), jnp.bfloat16)],
        compiler_params=pltpu.CompilerParams(dimension_semantics=("parallel",)),
    )(x_ld, w_band, bias_dense)


# ----------------------------------------------------------------------------
# kernel 2: ConvGRU, grid=(T,) sequential, B folded into the block.
#           Lane-dense hidden state / gates; three separate bf16 pad scratches.
# ----------------------------------------------------------------------------
def _conv_gru_kernel(x_ref, r0_ref, wx_ref, wh_ref, wrh_ref, brz_ref, bc_ref,
                     o_ref, h_ref, padx_ref, padh_ref, padrh_ref):
    # x_ref : (B, 1, H, W*C) bf16      r0_ref: (B, H, W*C) f32
    # wx    : (3, W*C, 3*W*C) bf16  gate-major [r_x | z_x | c_x]
    # wh    : (3, W*C, 2*W*C) bf16  [r_h | z_h]
    # wrh   : (3, W*C, W*C)   bf16  c_(r*h)
    # brz   : (1, 2*W*C) f32        bc: (1, W*C) f32
    # o_ref : (B, 1, H, W*C) f32
    # scratch: h_ref (B,H,W*C) f32; padx/padh/padrh (B,H+2,W*C) bf16
    t = pl.program_id(0)
    B, H, WC = h_ref.shape
    M = B * H

    @pl.when(t == 0)
    def _():
        h_ref[...] = r0_ref[...]
        zrow = jnp.zeros((B, 1, WC), jnp.bfloat16)
        padx_ref[:, 0:1, :] = zrow
        padx_ref[:, H + 1:H + 2, :] = zrow
        padh_ref[:, 0:1, :] = zrow
        padh_ref[:, H + 1:H + 2, :] = zrow
        padrh_ref[:, 0:1, :] = zrow
        padrh_ref[:, H + 1:H + 2, :] = zrow

    h = h_ref[...]                                   # (B, H, WC) f32
    h2 = h.reshape(M, WC)

    padx_ref[:, 1:H + 1, :] = x_ref[:, 0]            # already bf16
    padh_ref[:, 1:H + 1, :] = h.astype(jnp.bfloat16)

    xg = None
    hg = None
    for dy in range(3):
        xs = padx_ref[:, dy:dy + H, :].reshape(M, WC)
        hs = padh_ref[:, dy:dy + H, :].reshape(M, WC)
        xp = jnp.dot(xs, wx_ref[dy], preferred_element_type=jnp.float32)
        hp = jnp.dot(hs, wh_ref[dy], preferred_element_type=jnp.float32)
        xg = xp if xg is None else xg + xp            # (M, 3*WC)
        hg = hp if hg is None else hg + hp            # (M, 2*WC)

    rz = jax.nn.sigmoid(xg[:, :2 * WC] + hg + brz_ref[0])
    r_gate = rz[:, :WC]
    z = rz[:, WC:]
    c_x = xg[:, 2 * WC:]

    padrh_ref[:, 1:H + 1, :] = (r_gate * h2).astype(jnp.bfloat16).reshape(B, H, WC)
    cg = c_x + bc_ref[0]
    for dy in range(3):
        rs = padrh_ref[:, dy:dy + H, :].reshape(M, WC)
        cg = cg + jnp.dot(rs, wrh_ref[dy], preferred_element_type=jnp.float32)
    c = jnp.tanh(cg)

    h_new = (1.0 - z) * h2 + z * c                    # (M, WC) f32
    h_ref[...] = h_new.reshape(B, H, WC)
    o_ref[...] = h_new.reshape(B, 1, H, WC)


def conv_gru(xb, r0, wx, wh, wrh, brz, bc):
    # xb: (B, T, H, W*C) bf16, r0: (B, H, W*C) f32 -> (B, T, H, W*C) f32
    B, T, H, WC = xb.shape
    return pl.pallas_call(
        _conv_gru_kernel,
        out_shape=jax.ShapeDtypeStruct((B, T, H, WC), jnp.float32),
        grid=(T,),
        in_specs=[
            pl.BlockSpec((B, 1, H, WC), lambda t: (0, t, 0, 0)),
            pl.BlockSpec((B, H, WC), lambda t: (0, 0, 0)),
            pl.BlockSpec((3, WC, 3 * WC), lambda t: (0, 0, 0)),
            pl.BlockSpec((3, WC, 2 * WC), lambda t: (0, 0, 0)),
            pl.BlockSpec((3, WC, WC), lambda t: (0, 0, 0)),
            pl.BlockSpec((1, 2 * WC), lambda t: (0, 0)),
            pl.BlockSpec((1, WC), lambda t: (0, 0)),
        ],
        out_specs=pl.BlockSpec((B, 1, H, WC), lambda t: (0, t, 0, 0)),
        scratch_shapes=[
            pltpu.VMEM((B, H, WC), jnp.float32),
            pltpu.VMEM((B, H + 2, WC), jnp.bfloat16),
            pltpu.VMEM((B, H + 2, WC), jnp.bfloat16),
            pltpu.VMEM((B, H + 2, WC), jnp.bfloat16),
        ],
        compiler_params=pltpu.CompilerParams(dimension_semantics=("arbitrary",)),
    )(xb, r0, wx, wh, wrh, brz, bc)


# ----------------------------------------------------------------------------
# plain-JAX glue: PyTorch-exact bilinear 2x upsample (align_corners=False)
# ----------------------------------------------------------------------------
def upsample2x_nhwc(x):
    N, H, W, C = x.shape
    idx = jnp.arange(H)
    top = x[:, jnp.maximum(idx - 1, 0)]
    bot = x[:, jnp.minimum(idx + 1, H - 1)]
    even = 0.25 * top + 0.75 * x
    odd = 0.75 * x + 0.25 * bot
    xh = jnp.stack([even, odd], axis=2).reshape(N, 2 * H, W, C)

    idx = jnp.arange(W)
    left = xh[:, :, jnp.maximum(idx - 1, 0)]
    right = xh[:, :, jnp.minimum(idx + 1, W - 1)]
    even = 0.25 * left + 0.75 * xh
    odd = 0.75 * xh + 0.25 * right
    return jnp.stack([even, odd], axis=3).reshape(N, 2 * H, 2 * W, C)


# ----------------------------------------------------------------------------
# module: parameter init (banded, lane-dense layouts precomputed) + forward
# ----------------------------------------------------------------------------
def init_params(key, in_channels, src_channels, out_channels, W):
    C = out_channels // 2
    cin_tot = in_channels + src_channels
    ks = jax.random.split(key, 7)

    conv_w = 0.1 * jax.random.normal(ks[0], (3, 3, cin_tot, out_channels), jnp.float32)
    gamma = 1.0 + 0.1 * jax.random.normal(ks[1], (out_channels,), jnp.float32)
    beta = 0.1 * jax.random.normal(ks[2], (out_channels,), jnp.float32)
    running_mean = jnp.zeros((out_channels,), jnp.float32)
    running_var = jnp.ones((out_channels,), jnp.float32)
    eps = 1e-5
    scale = gamma / jnp.sqrt(running_var + eps)
    bias = beta - running_mean * scale

    wih = 0.1 * jax.random.normal(ks[3], (3, 3, 2 * C, 2 * C), jnp.float32)
    bih = 0.1 * jax.random.normal(ks[4], (2 * C,), jnp.float32)
    whh = 0.1 * jax.random.normal(ks[5], (3, 3, 2 * C, C), jnp.float32)
    bhh = 0.1 * jax.random.normal(ks[6], (C,), jnp.float32)

    # ---- conv: fold BN scale into the weight, build half-major banded weight
    w_np = np.asarray(conv_w) * np.asarray(scale)[None, None, None, :]
    conv_band = np.concatenate([_band(w_np[..., :C], W), _band(w_np[..., C:], W)],
                               axis=-1)                      # (3, W*cin_tot, 2*W*C)
    bias_np = np.asarray(bias)
    conv_bias = np.concatenate([np.tile(bias_np[:C], W),
                                np.tile(bias_np[C:], W)])[None]   # (1, 2*W*C)

    # ---- GRU: split cat([x,h]) convs along input channels (x first), banded,
    #           gate-major output columns [r | z | (c)] each of width W*C
    wih_np, whh_np = np.asarray(wih), np.asarray(whh)
    wx_band = np.concatenate([_band(wih_np[:, :, :C, :C], W),
                              _band(wih_np[:, :, :C, C:], W),
                              _band(whh_np[:, :, :C, :], W)], axis=-1)   # (3, W*C, 3*W*C)
    wh_band = np.concatenate([_band(wih_np[:, :, C:, :C], W),
                              _band(wih_np[:, :, C:, C:], W)], axis=-1)  # (3, W*C, 2*W*C)
    wrh_band = _band(whh_np[:, :, C:, :], W)                             # (3, W*C, W*C)
    bih_np, bhh_np = np.asarray(bih), np.asarray(bhh)
    brz = np.concatenate([np.tile(bih_np[:C], W), np.tile(bih_np[C:], W)])[None]
    bc = np.tile(bhh_np, W)[None]

    return {
        "conv_band": jnp.asarray(conv_band, jnp.bfloat16),
        "conv_bias": jnp.asarray(conv_bias, jnp.float32),
        "gru_wx": jnp.asarray(wx_band, jnp.bfloat16),
        "gru_wh": jnp.asarray(wh_band, jnp.bfloat16),
        "gru_wrh": jnp.asarray(wrh_band, jnp.bfloat16),
        "gru_brz": jnp.asarray(brz, jnp.float32),
        "gru_bc": jnp.asarray(bc, jnp.float32),
    }


def gru_upsampling_block_without_skip(x, s, r, params, out_channels):
    """Time-series forward.
    x: (B,T,Cin,Hs,Ws), s: (B,T,Csrc,H,W), r: None or (B,C,H,W)  (NCHW like PyTorch)
    returns (out (B,T,out_channels,H,W), r_new (B,C,H,W))."""
    B, T, Cin, Hs, Ws = x.shape
    _, _, Csrc, H, W = s.shape
    C = out_channels // 2
    cin_tot = Cin + Csrc

    # -> NHWC, flatten (B,T)
    xf = x.reshape(B * T, Cin, Hs, Ws).transpose(0, 2, 3, 1)
    sf = s.reshape(B * T, Csrc, H, W).transpose(0, 2, 3, 1)

    xu = upsample2x_nhwc(xf)[:, :H, :W, :]               # crop to s's H, W
    cat = jnp.concatenate([xu, sf], axis=-1)              # (BT, H, W, cin_tot)
    cat_ld = cat.reshape(B * T, H, W * cin_tot).astype(jnp.bfloat16)   # lane-dense

    # fused pad + conv3x3 + folded-BN bias + ReLU; a-half f32, b-half bf16
    a_ld, b_ld = conv_bn_relu(cat_ld, params["conv_band"], params["conv_bias"])

    bseq = b_ld.reshape(B, T, H, W * C)
    if r is None:
        r0 = jnp.zeros((B, H, W * C), jnp.float32)
    else:
        r0 = r.transpose(0, 2, 3, 1).reshape(B, H, W * C)

    o_ld = conv_gru(bseq, r0, params["gru_wx"], params["gru_wh"], params["gru_wrh"],
                    params["gru_brz"], params["gru_bc"])   # (B, T, H, W*C) f32

    a = a_ld.reshape(B, T, H, W, C)
    o = o_ld.reshape(B, T, H, W, C)
    out = jnp.concatenate([a, o], axis=-1).transpose(0, 1, 4, 2, 3)   # (B,T,Cout,H,W)
    r_new = o_ld[:, -1].reshape(B, H, W, C).transpose(0, 3, 1, 2)     # (B,C,H,W)
    return out, r_new


if __name__ == "__main__":
    B, T = 2, 3
    in_channels, src_channels, out_channels = 4, 4, 8
    H = W = 16
    Hs = Ws = H // 2

    key = jax.random.PRNGKey(0)
    kp, kx, ks = jax.random.split(key, 3)
    params = init_params(kp, in_channels, src_channels, out_channels, W)

    x = jax.random.normal(kx, (B, T, in_channels, Hs, Ws), jnp.float32)
    s = jax.random.normal(ks, (B, T, src_channels, H, W), jnp.float32)

    fwd = jax.jit(lambda xx, ss: gru_upsampling_block_without_skip(
        xx, ss, None, params, out_channels))
    out, r_new = jax.block_until_ready(fwd(x, s))

    assert out.shape == (B, T, out_channels, H, W), out.shape
    assert r_new.shape == (B, out_channels // 2, H, W), r_new.shape
    assert bool(jnp.all(jnp.isfinite(out))) and bool(jnp.all(jnp.isfinite(r_new)))
    print("KERNEL_OK")
</pallas_src>

<mosaic_0001>
module attributes {stable_mosaic.version = 11 : i64} {
  func.func @_conv_bn_relu_kernel(%arg0: i32, %arg1: memref<3x16x128xbf16, #tpu.memory_space<vmem>>, %arg2: memref<3x128x128xbf16, #tpu.memory_space<vmem>>, %arg3: memref<1x128xf32, #tpu.memory_space<vmem>>, %arg4: memref<3x16x64xf32, #tpu.memory_space<vmem>>, %arg5: memref<3x16x64xbf16, #tpu.memory_space<vmem>>, %arg6: memref<3x18x128xbf16, #tpu.memory_space<vmem>>) attributes {dimension_semantics = [#tpu.dimension_semantics<parallel>], iteration_bounds = array<i64: 2>, scalar_prefetch = 0 : i64, scratch_operands = 1 : i64, tpu.core_type = #tpu.core_type<tc>, window_params = [{transform_indices = @transform_0, window_bounds = array<i64: 3, 16, 128>}, {pipeline_mode = #tpu.pipeline_mode<synchronous>, transform_indices = @transform_1, window_bounds = array<i64: 3, 128, 128>}, {pipeline_mode = #tpu.pipeline_mode<synchronous>, transform_indices = @transform_2, window_bounds = array<i64: 1, 128>}, {transform_indices = @transform_3, window_bounds = array<i64: 3, 16, 64>}, {transform_indices = @transform_4, window_bounds = array<i64: 3, 16, 64>}]} {
    %cst = arith.constant 0.000000e+00 : bf16
    %0 = vector.broadcast %cst : bf16 to vector<3x1x128xbf16>
    %c0 = arith.constant 0 : index
    %c0_0 = arith.constant 0 : index
    %c0_1 = arith.constant 0 : index
    %1 = vector.load %arg6[%c0, %c0_0, %c0_1] : memref<3x18x128xbf16, #tpu.memory_space<vmem>>, vector<3x1x128xbf16>
    tpu.vector_store %arg6[%c0, %c0_0, %c0_1], %0 {strides = array<i32>} : memref<3x18x128xbf16, #tpu.memory_space<vmem>>, vector<3x1x128xbf16>,
    %c0_2 = arith.constant 0 : index
    %c17 = arith.constant 17 : index
    %c0_3 = arith.constant 0 : index
    %2 = vector.load %arg6[%c0_2, %c17, %c0_3] : memref<3x18x128xbf16, #tpu.memory_space<vmem>>, vector<3x1x128xbf16>
    tpu.vector_store %arg6[%c0_2, %c17, %c0_3], %0 {strides = array<i32>} : memref<3x18x128xbf16, #tpu.memory_space<vmem>>, vector<3x1x128xbf16>,
    %c0_4 = arith.constant 0 : index
    %c0_5 = arith.constant 0 : index
    %c0_6 = arith.constant 0 : index
    %3 = vector.load %arg1[%c0_4, %c0_5, %c0_6] : memref<3x16x128xbf16, #tpu.memory_space<vmem>>, vector<3x16x128xbf16>
    %c0_7 = arith.constant 0 : index
    %c1 = arith.constant 1 : index
    %c0_8 = arith.constant 0 : index
    %4 = vector.load %arg6[%c0_7, %c1, %c0_8] : memref<3x18x128xbf16, #tpu.memory_space<vmem>>, vector<3x16x128xbf16>
    tpu.vector_store %arg6[%c0_7, %c1, %c0_8], %3 {strides = array<i32>} : memref<3x18x128xbf16, #tpu.memory_space<vmem>>, vector<3x16x128xbf16>,
    %c0_9 = arith.constant 0 : index
    %c0_10 = arith.constant 0 : index
    %c0_11 = arith.constant 0 : index
    %5 = vector.load %arg6[%c0_9, %c0_10, %c0_11] : memref<3x18x128xbf16, #tpu.memory_space<vmem>>, vector<3x16x128xbf16>
    %6 = vector.shape_cast %5 : vector<3x16x128xbf16> to vector<48x128xbf16>
    %c0_12 = arith.constant 0 : index
    %c0_13 = arith.constant 0 : index
    %c0_14 = arith.constant 0 : index
    %7 = vector.load %arg2[%c0_12, %c0_13, %c0_14] : memref<3x128x128xbf16, #tpu.memory_space<vmem>>, vector<1x128x128xbf16>
    %8 = vector.shape_cast %7 : vector<1x128x128xbf16> to vector<128x128xbf16>
    %cst_15 = arith.constant dense<0.000000e+00> : vector<48x128xf32>
    %9 = tpu.matmul %6, %8, %cst_15 {dimension_numbers = #tpu.dot_dimension_numbers<[1], [0], [0], [1], [0, 0, 1, 1], [], []>} : vector<48x128xbf16>, vector<128x128xbf16>, vector<48x128xf32> -> vector<48x128xf32>
    %c0_16 = arith.constant 0 : index
    %c1_17 = arith.constant 1 : index
    %c0_18 = arith.constant 0 : index
    %10 = vector.load %arg6[%c0_16, %c1_17, %c0_18] : memref<3x18x128xbf16, #tpu.memory_space<vmem>>, vector<3x16x128xbf16>
    %11 = vector.shape_cast %10 : vector<3x16x128xbf16> to vector<48x128xbf16>
    %c1_19 = arith.constant 1 : index
    %c0_20 = arith.constant 0 : index
    %c0_21 = arith.constant 0 : index
    %12 = vector.load %arg2[%c1_19, %c0_20, %c0_21] : memref<3x128x128xbf16, #tpu.memory_space<vmem>>, vector<1x128x128xbf16>
    %13 = vector.shape_cast %12 : vector<1x128x128xbf16> to vector<128x128xbf16>
    %cst_22 = arith.constant dense<0.000000e+00> : vector<48x128xf32>
    %14 = tpu.matmul %11, %13, %cst_22 {dimension_numbers = #tpu.dot_dimension_numbers<[1], [0], [0], [1], [0, 0, 1, 1], [], []>} : vector<48x128xbf16>, vector<128x128xbf16>, vector<48x128xf32> -> vector<48x128xf32>
    %15 = arith.addf %9, %14 : vector<48x128xf32>
    %c0_23 = arith.constant 0 : index
    %c2 = arith.constant 2 : index
    %c0_24 = arith.constant 0 : index
    %16 = vector.load %arg6[%c0_23, %c2, %c0_24] : memref<3x18x128xbf16, #tpu.memory_space<vmem>>, vector<3x16x128xbf16>
    %17 = vector.shape_cast %16 : vector<3x16x128xbf16> to vector<48x128xbf16>
    %c2_25 = arith.constant 2 : index
    %c0_26 = arith.constant 0 : index
    %c0_27 = arith.constant 0 : index
    %18 = vector.load %arg2[%c2_25, %c0_26, %c0_27] : memref<3x128x128xbf16, #tpu.memory_space<vmem>>, vector<1x128x128xbf16>
    %19 = vector.shape_cast %18 : vector<1x128x128xbf16> to vector<128x128xbf16>
    %cst_28 = arith.constant dense<0.000000e+00> : vector<48x128xf32>
    %20 = tpu.matmul %17, %19, %cst_28 {dimension_numbers = #tpu.dot_dimension_numbers<[1], [0], [0], [1], [0, 0, 1, 1], [], []>} : vector<48x128xbf16>, vector<128x128xbf16>, vector<48x128xf32> -> vector<48x128xf32>
    %21 = arith.addf %15, %20 : vector<48x128xf32>
    %c0_29 = arith.constant 0 : index
    %c0_30 = arith.constant 0 : index
    %22 = vector.load %arg3[%c0_29, %c0_30] : memref<1x128xf32, #tpu.memory_space<vmem>>, vector<1x128xf32>
    %23 = vector.shape_cast %22 : vector<1x128xf32> to vector<128xf32>
    %24 = vector.shape_cast %23 : vector<128xf32> to vector<1x128xf32>
    %25 = vector.broadcast %24 : vector<1x128xf32> to vector<48x128xf32>
    %26 = arith.addf %21, %25 : vector<48x128xf32>
    %cst_31 = arith.constant 0.000000e+00 : f32
    %27 = vector.broadcast %cst_31 : f32 to vector<48x128xf32>
    %28 = arith.maximumf %26, %27 : vector<48x128xf32>
    %29 = vector.extract_strided_slice %28 {offsets = [0, 0], sizes = [48, 64], strides = [1, 1]} : vector<48x128xf32> to vector<48x64xf32>
    %30 = vector.shape_cast %29 : vector<48x64xf32> to vector<3x16x64xf32>
    %c0_32 = arith.constant 0 : index
    %c0_33 = arith.constant 0 : index
    %c0_34 = arith.constant 0 : index
    %31 = vector.load %arg4[%c0_32, %c0_33, %c0_34] : memref<3x16x64xf32, #tpu.memory_space<vmem>>, vector<3x16x64xf32>
    tpu.vector_store %arg4[%c0_32, %c0_33, %c0_34], %30 {strides = array<i32>} : memref<3x16x64xf32, #tpu.memory_space<vmem>>, vector<3x16x64xf32>,
    %32 = vector.extract_strided_slice %28 {offsets = [0, 64], sizes = [48, 64], strides = [1, 1]} : vector<48x128xf32> to vector<48x64xf32>
    %33 = vector.shape_cast %32 : vector<48x64xf32> to vector<3x16x64xf32>
    %34 = arith.truncf %33 : vector<3x16x64xf32> to vector<3x16x64xbf16>
    %c0_35 = arith.constant 0 : index
    %c0_36 = arith.constant 0 : index
    %c0_37 = arith.constant 0 : index
    %35 = vector.load %arg5[%c0_35, %c0_36, %c0_37] : memref<3x16x64xbf16, #tpu.memory_space<vmem>>, vector<3x16x64xbf16>
    tpu.vector_store %arg5[%c0_35, %c0_36, %c0_37], %34 {strides = array<i32>} : memref<3x16x64xbf16, #tpu.memory_space<vmem>>, vector<3x16x64xbf16>,
    return
  }
  func.func @transform_0(%arg0: i32) -> (i32, i32, i32) {
    %c0_i32 = arith.constant 0 : i32
    %c0_i32_0 = arith.constant 0 : i32
    %c0_i32_1 = arith.constant 0 : i32
    return %arg0, %c0_i32, %c0_i32_0 : i32, i32, i32
  }
  func.func @transform_1(%arg0: i32) -> (i32, i32, i32) {
    %c0_i32 = arith.constant 0 : i32
    %c0_i32_0 = arith.constant 0 : i32
    %c0_i32_1 = arith.constant 0 : i32
    %c0_i32_2 = arith.constant 0 : i32
    return %c0_i32, %c0_i32_0, %c0_i32_1 : i32, i32, i32
  }
  func.func @transform_2(%arg0: i32) -> (i32, i32) {
    %c0_i32 = arith.constant 0 : i32
    %c0_i32_0 = arith.constant 0 : i32
    %c0_i32_1 = arith.constant 0 : i32
    return %c0_i32, %c0_i32_0 : i32, i32
  }
  func.func @transform_3(%arg0: i32) -> (i32, i32, i32) {
    %c0_i32 = arith.constant 0 : i32
    %c0_i32_0 = arith.constant 0 : i32
    %c0_i32_1 = arith.constant 0 : i32
    return %arg0, %c0_i32, %c0_i32_0 : i32, i32, i32
  }
  func.func @transform_4(%arg0: i32) -> (i32, i32, i32) {
    %c0_i32 = arith.constant 0 : i32
    %c0_i32_0 = arith.constant 0 : i32
    %c0_i32_1 = arith.constant 0 : i32
    return %arg0, %c0_i32, %c0_i32_0 : i32, i32, i32
  }
}

module attributes {stable_mosaic.version = 11 : i64} {
  func.func @_conv_gru_kernel(%arg0: i32, %arg1: memref<2x1x16x64xbf16, #tpu.memory_space<vmem>>, %arg2: memref<2x16x64xf32, #tpu.memory_space<vmem>>, %arg3: memref<3x64x192xbf16, #tpu.memory_space<vmem>>, %arg4: memref<3x64x128xbf16, #tpu.memory_space<vmem>>, %arg5: memref<3x64x64xbf16, #tpu.memory_space<vmem>>, %arg6: memref<1x128xf32, #tpu.memory_space<vmem>>, %arg7: memref<1x64xf32, #tpu.memory_space<vmem>>, %arg8: memref<2x1x16x64xf32, #tpu.memory_space<vmem>>, %arg9: memref<2x16x64xf32, #tpu.memory_space<vmem>>, %arg10: memref<2x18x64xbf16, #tpu.memory_space<vmem>>, %arg11: memref<2x18x64xbf16, #tpu.memory_space<vmem>>, %arg12: memref<2x18x64xbf16, #tpu.memory_space<vmem>>) attributes {dimension_semantics = [#tpu.dimension_semantics<arbitrary>], iteration_bounds = array<i64: 3>, scalar_prefetch = 0 : i64, scratch_operands = 4 : i64, tpu.core_type = #tpu.core_type<tc>, window_params = [{transform_indices = @transform_0, window_bounds = array<i64: 2, 1, 16, 64>}, {pipeline_mode = #tpu.pipeline_mode<synchronous>, transform_indices = @transform_1, window_bounds = array<i64: 2, 16, 64>}, {pipeline_mode = #tpu.pipeline_mode<synchronous>, transform_indices = @transform_2, window_bounds = array<i64: 3, 64, 192>}, {pipeline_mode = #tpu.pipeline_mode<synchronous>, transform_indices = @transform_3, window_bounds = array<i64: 3, 64, 128>}, {pipeline_mode = #tpu.pipeline_mode<synchronous>, transform_indices = @transform_4, window_bounds = array<i64: 3, 64, 64>}, {pipeline_mode = #tpu.pipeline_mode<synchronous>, transform_indices = @transform_5, window_bounds = array<i64: 1, 128>}, {pipeline_mode = #tpu.pipeline_mode<synchronous>, transform_indices = @transform_6, window_bounds = array<i64: 1, 64>}, {transform_indices = @transform_7, window_bounds = array<i64: 2, 1, 16, 64>}]} {
    %c0_i32 = arith.constant 0 : i32
    %0 = arith.cmpi eq, %arg0, %c0_i32 : i32
    %1 = arith.extui %0 : i1 to i32
    %c0_i32_0 = arith.constant 0 : i32
    %2 = arith.cmpi ne, %1, %c0_i32_0 : i32
    scf.if %2 {
      %c0_89 = arith.constant 0 : index
      %c0_90 = arith.constant 0 : index
      %c0_91 = arith.constant 0 : index
      %96 = vector.load %arg2[%c0_89, %c0_90, %c0_91] : memref<2x16x64xf32, #tpu.memory_space<vmem>>, vector<2x16x64xf32>
      %c0_92 = arith.constant 0 : index
      %c0_93 = arith.constant 0 : index
      %c0_94 = arith.constant 0 : index
      %97 = vector.load %arg9[%c0_92, %c0_93, %c0_94] : memref<2x16x64xf32, #tpu.memory_space<vmem>>, vector<2x16x64xf32>
      tpu.vector_store %arg9[%c0_92, %c0_93, %c0_94], %96 {strides = array<i32>} : memref<2x16x64xf32, #tpu.memory_space<vmem>>, vector<2x16x64xf32>,
      %cst_95 = arith.constant 0.000000e+00 : bf16
      %98 = vector.broadcast %cst_95 : bf16 to vector<2x1x64xbf16>
      %c0_96 = arith.constant 0 : index
      %c0_97 = arith.constant 0 : index
      %c0_98 = arith.constant 0 : index
      %99 = vector.load %arg10[%c0_96, %c0_97, %c0_98] : memref<2x18x64xbf16, #tpu.memory_space<vmem>>, vector<2x1x64xbf16>
      tpu.vector_store %arg10[%c0_96, %c0_97, %c0_98], %98 {strides = array<i32>} : memref<2x18x64xbf16, #tpu.memory_space<vmem>>, vector<2x1x64xbf16>,
      %c0_99 = arith.constant 0 : index
      %c17 = arith.constant 17 : index
      %c0_100 = arith.constant 0 : index
      %100 = vector.load %arg10[%c0_99, %c17, %c0_100] : memref<2x18x64xbf16, #tpu.memory_space<vmem>>, vector<2x1x64xbf16>
      tpu.vector_store %arg10[%c0_99, %c17, %c0_100], %98 {strides = array<i32>} : memref<2x18x64xbf16, #tpu.memory_space<vmem>>, vector<2x1x64xbf16>,
      %c0_101 = arith.constant 0 : index
      %c0_102 = arith.constant 0 : index
      %c0_103 = arith.constant 0 : index
      %101 = vector.load %arg11[%c0_101, %c0_102, %c0_103] : memref<2x18x64xbf16, #tpu.memory_space<vmem>>, vector<2x1x64xbf16>
      tpu.vector_store %arg11[%c0_101, %c0_102, %c0_103], %98 {strides = array<i32>} : memref<2x18x64xbf16, #tpu.memory_space<vmem>>, vector<2x1x64xbf16>,
      %c0_104 = arith.constant 0 : index
      %c17_105 = arith.constant 17 : index
      %c0_106 = arith.constant 0 : index
      %102 = vector.load %arg11[%c0_104, %c17_105, %c0_106] : memref<2x18x64xbf16, #tpu.memory_space<vmem>>, vector<2x1x64xbf16>
      tpu.vector_store %arg11[%c0_104, %c17_105, %c0_106], %98 {strides = array<i32>} : memref<2x18x64xbf16, #tpu.memory_space<vmem>>, vector<2x1x64xbf16>,
      %c0_107 = arith.constant 0 : index
      %c0_108 = arith.constant 0 : index
      %c0_109 = arith.constant 0 : index
      %103 = vector.load %arg12[%c0_107, %c0_108, %c0_109] : memref<2x18x64xbf16, #tpu.memory_space<vmem>>, vector<2x1x64xbf16>
      tpu.vector_store %arg12[%c0_107, %c0_108, %c0_109], %98 {strides = array<i32>} : memref<2x18x64xbf16, #tpu.memory_space<vmem>>, vector<2x1x64xbf16>,
      %c0_110 = arith.constant 0 : index
      %c17_111 = arith.constant 17 : index
      %c0_112 = arith.constant 0 : index
      %104 = vector.load %arg12[%c0_110, %c17_111, %c0_112] : memref<2x18x64xbf16, #tpu.memory_space<vmem>>, vector<2x1x64xbf16>
      tpu.vector_store %arg12[%c0_110, %c17_111, %c0_112], %98 {strides = array<i32>} : memref<2x18x64xbf16, #tpu.memory_space<vmem>>, vector<2x1x64xbf16>,
    } else {
    }
    %c0 = arith.constant 0 : index
    %c0_1 = arith.constant 0 : index
    %c0_2 = arith.constant 0 : index
    %3 = vector.load %arg9[%c0, %c0_1, %c0_2] : memref<2x16x64xf32, #tpu.memory_space<vmem>>, vector<2x16x64xf32>
    %4 = vector.shape_cast %3 : vector<2x16x64xf32> to vector<32x64xf32>
    %c0_3 = arith.constant 0 : index
    %c0_4 = arith.constant 0 : index
    %c0_5 = arith.constant 0 : index
    %c0_6 = arith.constant 0 : index
    %5 = vector.load %arg1[%c0_3, %c0_4, %c0_5, %c0_6] : memref<2x1x16x64xbf16, #tpu.memory_space<vmem>>, vector<2x1x16x64xbf16>
    %6 = vector.shape_cast %5 : vector<2x1x16x64xbf16> to vector<2x16x64xbf16>
    %c0_7 = arith.constant 0 : index
    %c1 = arith.constant 1 : index
    %c0_8 = arith.constant 0 : index
    %7 = vector.load %arg10[%c0_7, %c1, %c0_8] : memref<2x18x64xbf16, #tpu.memory_space<vmem>>, vector<2x16x64xbf16>
    tpu.vector_store %arg10[%c0_7, %c1, %c0_8], %6 {strides = array<i32>} : memref<2x18x64xbf16, #tpu.memory_space<vmem>>, vector<2x16x64xbf16>,
    %8 = arith.truncf %3 : vector<2x16x64xf32> to vector<2x16x64xbf16>
    %c0_9 = arith.constant 0 : index
    %c1_10 = arith.constant 1 : index
    %c0_11 = arith.constant 0 : index
    %9 = vector.load %arg11[%c0_9, %c1_10, %c0_11] : memref<2x18x64xbf16, #tpu.memory_space<vmem>>, vector<2x16x64xbf16>
    tpu.vector_store %arg11[%c0_9, %c1_10, %c0_11], %8 {strides = array<i32>} : memref<2x18x64xbf16, #tpu.memory_space<vmem>>, vector<2x16x64xbf16>,
    %c0_12 = arith.constant 0 : index
    %c0_13 = arith.constant 0 : index
    %c0_14 = arith.constant 0 : index
    %10 = vector.load %arg10[%c0_12, %c0_13, %c0_14] : memref<2x18x64xbf16, #tpu.memory_space<vmem>>, vector<2x16x64xbf16>
    %11 = vector.shape_cast %10 : vector<2x16x64xbf16> to vector<32x64xbf16>
    %c0_15 = arith.constant 0 : index
    %c0_16 = arith.constant 0 : index
    %c0_17 = arith.constant 0 : index
    %12 = vector.load %arg11[%c0_15, %c0_16, %c0_17] : memref<2x18x64xbf16, #tpu.memory_space<vmem>>, vector<2x16x64xbf16>
    %13 = vector.shape_cast %12 : vector<2x16x64xbf16> to vector<32x64xbf16>
    %c0_18 = arith.constant 0 : index
    %c0_19 = arith.constant 0 : index
    %c0_20 = arith.constant 0 : index
    %14 = vector.load %arg3[%c0_18, %c0_19, %c0_20] : memref<3x64x192xbf16, #tpu.memory_space<vmem>>, vector<1x64x192xbf16>
    %15 = vector.shape_cast %14 : vector<1x64x192xbf16> to vector<64x192xbf16>
    %cst = arith.constant dense<0.000000e+00> : vector<32x192xf32>
    %16 = tpu.matmul %11, %15, %cst {dimension_numbers = #tpu.dot_dimension_numbers<[1], [0], [0], [1], [0, 0, 1, 1], [], []>} : vector<32x64xbf16>, vector<64x192xbf16>, vector<32x192xf32> -> vector<32x192xf32>
    %c0_21 = arith.constant 0 : index
    %c0_22 = arith.constant 0 : index
    %c0_23 = arith.constant 0 : index
    %17 = vector.load %arg4[%c0_21, %c0_22, %c0_23] : memref<3x64x128xbf16, #tpu.memory_space<vmem>>, vector<1x64x128xbf16>
    %18 = vector.shape_cast %17 : vector<1x64x128xbf16> to vector<64x128xbf16>
    %cst_24 = arith.constant dense<0.000000e+00> : vector<32x128xf32>
    %19 = tpu.matmul %13, %18, %cst_24 {dimension_numbers = #tpu.dot_dimension_numbers<[1], [0], [0], [1], [0, 0, 1, 1], [], []>} : vector<32x64xbf16>, vector<64x128xbf16>, vector<32x128xf32> -> vector<32x128xf32>
    %c0_25 = arith.constant 0 : index
    %c1_26 = arith.constant 1 : index
    %c0_27 = arith.constant 0 : index
    %20 = vector.load %arg10[%c0_25, %c1_26, %c0_27] : memref<2x18x64xbf16, #tpu.memory_space<vmem>>, vector<2x16x64xbf16>
    %21 = vector.shape_cast %20 : vector<2x16x64xbf16> to vector<32x64xbf16>
    %c0_28 = arith.constant 0 : index
    %c1_29 = arith.constant 1 : index
    %c0_30 = arith.constant 0 : index
    %22 = vector.load %arg11[%c0_28, %c1_29, %c0_30] : memref<2x18x64xbf16, #tpu.memory_space<vmem>>, vector<2x16x64xbf16>
    %23 = vector.shape_cast %22 : vector<2x16x64xbf16> to vector<32x64xbf16>
    %c1_31 = arith.constant 1 : index
    %c0_32 = arith.constant 0 : index
    %c0_33 = arith.constant 0 : index
    %24 = vector.load %arg3[%c1_31, %c0_32, %c0_33] : memref<3x64x192xbf16, #tpu.memory_space<vmem>>, vector<1x64x192xbf16>
    %25 = vector.shape_cast %24 : vector<1x64x192xbf16> to vector<64x192xbf16>
    %cst_34 = arith.constant dense<0.000000e+00> : vector<32x192xf32>
    %26 = tpu.matmul %21, %25, %cst_34 {dimension_numbers = #tpu.dot_dimension_numbers<[1], [0], [0], [1], [0, 0, 1, 1], [], []>} : vector<32x64xbf16>, vector<64x192xbf16>, vector<32x192xf32> -> vector<32x192xf32>
    %c1_35 = arith.constant 1 : index
    %c0_36 = arith.constant 0 : index
    %c0_37 = arith.constant 0 : index
    %27 = vector.load %arg4[%c1_35, %c0_36, %c0_37] : memref<3x64x128xbf16, #tpu.memory_space<vmem>>, vector<1x64x128xbf16>
    %28 = vector.shape_cast %27 : vector<1x64x128xbf16> to vector<64x128xbf16>
    %cst_38 = arith.constant dense<0.000000e+00> : vector<32x128xf32>
    %29 = tpu.matmul %23, %28, %cst_38 {dimension_numbers = #tpu.dot_dimension_numbers<[1], [0], [0], [1], [0, 0, 1, 1], [], []>} : vector<32x64xbf16>, vector<64x128xbf16>, vector<32x128xf32> -> vector<32x128xf32>
    %30 = arith.addf %16, %26 : vector<32x192xf32>
    %31 = arith.addf %19, %29 : vector<32x128xf32>
    %c0_39 = arith.constant 0 : index
    %c2 = arith.constant 2 : index
    %c0_40 = arith.constant 0 : index
    %32 = vector.load %arg10[%c0_39, %c2, %c0_40] : memref<2x18x64xbf16, #tpu.memory_space<vmem>>, vector<2x16x64xbf16>
    %33 = vector.shape_cast %32 : vector<2x16x64xbf16> to vector<32x64xbf16>
    %c0_41 = arith.constant 0 : index
    %c2_42 = arith.constant 2 : index
    %c0_43 = arith.constant 0 : index
    %34 = vector.load %arg11[%c0_41, %c2_42, %c0_43] : memref<2x18x64xbf16, #tpu.memory_space<vmem>>, vector<2x16x64xbf16>
    %35 = vector.shape_cast %34 : vector<2x16x64xbf16> to vector<32x64xbf16>
    %c2_44 = arith.constant 2 : index
    %c0_45 = arith.constant 0 : index
    %c0_46 = arith.constant 0 : index
    %36 = vector.load %arg3[%c2_44, %c0_45, %c0_46] : memref<3x64x192xbf16, #tpu.memory_space<vmem>>, vector<1x64x192xbf16>
    %37 = vector.shape_cast %36 : vector<1x64x192xbf16> to vector<64x192xbf16>
    %cst_47 = arith.constant dense<0.000000e+00> : vector<32x192xf32>
    %38 = tpu.matmul %33, %37, %cst_47 {dimension_numbers = #tpu.dot_dimension_numbers<[1], [0], [0], [1], [0, 0, 1, 1], [], []>} : vector<32x64xbf16>, vector<64x192xbf16>, vector<32x192xf32> -> vector<32x192xf32>
    %c2_48 = arith.constant 2 : index
    %c0_49 = arith.constant 0 : index
    %c0_50 = arith.constant 0 : index
    %39 = vector.load %arg4[%c2_48, %c0_49, %c0_50] : memref<3x64x128xbf16, #tpu.memory_space<vmem>>, vector<1x64x128xbf16>
    %40 = vector.shape_cast %39 : vector<1x64x128xbf16> to vector<64x128xbf16>
    %cst_51 = arith.constant dense<0.000000e+00> : vector<32x128xf32>
    %41 = tpu.matmul %35, %40, %cst_51 {dimension_numbers = #tpu.dot_dimension_numbers<[1], [0], [0], [1], [0, 0, 1, 1], [], []>} : vector<32x64xbf16>, vector<64x128xbf16>, vector<32x128xf32> -> vector<32x128xf32>
    %42 = arith.addf %30, %38 : vector<32x192xf32>
    %43 = arith.addf %31, %41 : vector<32x128xf32>
    %44 = vector.extract_strided_slice %42 {offsets = [0, 0], sizes = [32, 128], strides = [1, 1]} : vector<32x192xf32> to vector<32x128xf32>
    %45 = arith.addf %44, %43 : vector<32x128xf32>
    %c0_52 = arith.constant 0 : index
    %c0_53 = arith.constant 0 : index
    %46 = vector.load %arg6[%c0_52, %c0_53] : memref<1x128xf32, #tpu.memory_space<vmem>>, vector<1x128xf32>
    %47 = vector.shape_cast %46 : vector<1x128xf32> to vector<128xf32>
    %48 = vector.shape_cast %47 : vector<128xf32> to vector<1x128xf32>
    %49 = vector.broadcast %48 : vector<1x128xf32> to vector<32x128xf32>
    %50 = arith.addf %45, %49 : vector<32x128xf32>
    %51 = arith.negf %50 : vector<32x128xf32>
    %52 = math.exp %51 : vector<32x128xf32>
    %cst_54 = arith.constant 1.000000e+00 : f32
    %53 = vector.broadcast %cst_54 : f32 to vector<32x128xf32>
    %54 = arith.addf %53, %52 : vector<32x128xf32>
    %55 = arith.divf %53, %54 : vector<32x128xf32>
    %56 = vector.extract_strided_slice %55 {offsets = [0, 0], sizes = [32, 64], strides = [1, 1]} : vector<32x128xf32> to vector<32x64xf32>
    %57 = vector.extract_strided_slice %55 {offsets = [0, 64], sizes = [32, 64], strides = [1, 1]} : vector<32x128xf32> to vector<32x64xf32>
    %58 = vector.extract_strided_slice %42 {offsets = [0, 128], sizes = [32, 64], strides = [1, 1]} : vector<32x192xf32> to vector<32x64xf32>
    %59 = arith.mulf %56, %4 : vector<32x64xf32>
    %60 = arith.truncf %59 : vector<32x64xf32> to vector<32x64xbf16>
    %61 = vector.shape_cast %60 : vector<32x64xbf16> to vector<2x16x64xbf16>
    %c0_55 = arith.constant 0 : index
    %c1_56 = arith.constant 1 : index
    %c0_57 = arith.constant 0 : index
    %62 = vector.load %arg12[%c0_55, %c1_56, %c0_57] : memref<2x18x64xbf16, #tpu.memory_space<vmem>>, vector<2x16x64xbf16>
    tpu.vector_store %arg12[%c0_55, %c1_56, %c0_57], %61 {strides = array<i32>} : memref<2x18x64xbf16, #tpu.memory_space<vmem>>, vector<2x16x64xbf16>,
    %c0_58 = arith.constant 0 : index
    %c0_59 = arith.constant 0 : index
    %63 = vector.load %arg7[%c0_58, %c0_59] : memref<1x64xf32, #tpu.memory_space<vmem>>, vector<1x64xf32>
    %64 = vector.shape_cast %63 : vector<1x64xf32> to vector<64xf32>
    %65 = vector.shape_cast %64 : vector<64xf32> to vector<1x64xf32>
    %66 = vector.broadcast %65 : vector<1x64xf32> to vector<32x64xf32>
    %67 = arith.addf %58, %66 : vector<32x64xf32>
    %c0_60 = arith.constant 0 : index
    %c0_61 = arith.constant 0 : index
    %c0_62 = arith.constant 0 : index
    %68 = vector.load %arg12[%c0_60, %c0_61, %c0_62] : memref<2x18x64xbf16, #tpu.memory_space<vmem>>, vector<2x16x64xbf16>
    %69 = vector.shape_cast %68 : vector<2x16x64xbf16> to vector<32x64xbf16>
    %c0_63 = arith.constant 0 : index
    %c0_64 = arith.constant 0 : index
    %c0_65 = arith.constant 0 : index
    %70 = vector.load %arg5[%c0_63, %c0_64, %c0_65] : memref<3x64x64xbf16, #tpu.memory_space<vmem>>, vector<1x64x64xbf16>
    %71 = vector.shape_cast %70 : vector<1x64x64xbf16> to vector<64x64xbf16>
    %cst_66 = arith.constant dense<0.000000e+00> : vector<32x64xf32>
    %72 = tpu.matmul %69, %71, %cst_66 {dimension_numbers = #tpu.dot_dimension_numbers<[1], [0], [0], [1], [0, 0, 1, 1], [], []>} : vector<32x64xbf16>, vector<64x64xbf16>, vector<32x64xf32> -> vector<32x64xf32>
    %73 = arith.addf %67, %72 : vector<32x64xf32>
    %c0_67 = arith.constant 0 : index
    %c1_68 = arith.constant 1 : index
    %c0_69 = arith.constant 0 : index
    %74 = vector.load %arg12[%c0_67, %c1_68, %c0_69] : memref<2x18x64xbf16, #tpu.memory_space<vmem>>, vector<2x16x64xbf16>
    %75 = vector.shape_cast %74 : vector<2x16x64xbf16> to vector<32x64xbf16>
    %c1_70 = arith.constant 1 : index
    %c0_71 = arith.constant 0 : index
    %c0_72 = arith.constant 0 : index
    %76 = vector.load %arg5[%c1_70, %c0_71, %c0_72] : memref<3x64x64xbf16, #tpu.memory_space<vmem>>, vector<1x64x64xbf16>
    %77 = vector.shape_cast %76 : vector<1x64x64xbf16> to vector<64x64xbf16>
    %cst_73 = arith.constant dense<0.000000e+00> : vector<32x64xf32>
    %78 = tpu.matmul %75, %77, %cst_73 {dimension_numbers = #tpu.dot_dimension_numbers<[1], [0], [0], [1], [0, 0, 1, 1], [], []>} : vector<32x64xbf16>, vector<64x64xbf16>, vector<32x64xf32> -> vector<32x64xf32>
    %79 = arith.addf %73, %78 : vector<32x64xf32>
    %c0_74 = arith.constant 0 : index
    %c2_75 = arith.constant 2 : index
    %c0_76 = arith.constant 0 : index
    %80 = vector.load %arg12[%c0_74, %c2_75, %c0_76] : memref<2x18x64xbf16, #tpu.memory_space<vmem>>, vector<2x16x64xbf16>
    %81 = vector.shape_cast %80 : vector<2x16x64xbf16> to vector<32x64xbf16>
    %c2_77 = arith.constant 2 : index
    %c0_78 = arith.constant 0 : index
    %c0_79 = arith.constant 0 : index
    %82 = vector.load %arg5[%c2_77, %c0_78, %c0_79] : memref<3x64x64xbf16, #tpu.memory_space<vmem>>, vector<1x64x64xbf16>
    %83 = vector.shape_cast %82 : vector<1x64x64xbf16> to vector<64x64xbf16>
    %cst_80 = arith.constant dense<0.000000e+00> : vector<32x64xf32>
    %84 = tpu.matmul %81, %83, %cst_80 {dimension_numbers = #tpu.dot_dimension_numbers<[1], [0], [0], [1], [0, 0, 1, 1], [], []>} : vector<32x64xbf16>, vector<64x64xbf16>, vector<32x64xf32> -> vector<32x64xf32>
    %85 = arith.addf %79, %84 : vector<32x64xf32>
    %86 = math.tanh %85 : vector<32x64xf32>
    %cst_81 = arith.constant 1.000000e+00 : f32
    %87 = vector.broadcast %cst_81 : f32 to vector<32x64xf32>
    %88 = arith.subf %87, %57 : vector<32x64xf32>
    %89 = arith.mulf %88, %4 : vector<32x64xf32>
    %90 = arith.mulf %57, %86 : vector<32x64xf32>
    %91 = arith.addf %89, %90 : vector<32x64xf32>
    %92 = vector.shape_cast %91 : vector<32x64xf32> to vector<2x16x64xf32>
    %c0_82 = arith.constant 0 : index
    %c0_83 = arith.constant 0 : index
    %c0_84 = arith.constant 0 : index
    %93 = vector.load %arg9[%c0_82, %c0_83, %c0_84] : memref<2x16x64xf32, #tpu.memory_space<vmem>>, vector<2x16x64xf32>
    tpu.vector_store %arg9[%c0_82, %c0_83, %c0_84], %92 {strides = array<i32>} : memref<2x16x64xf32, #tpu.memory_space<vmem>>, vector<2x16x64xf32>,
    %94 = vector.shape_cast %91 : vector<32x64xf32> to vector<2x1x16x64xf32>
    %c0_85 = arith.constant 0 : index
    %c0_86 = arith.constant 0 : index
    %c0_87 = arith.constant 0 : index
    %c0_88 = arith.constant 0 : index
    %95 = vector.load %arg8[%c0_85, %c0_86, %c0_87, %c0_88] : memref<2x1x16x64xf32, #tpu.memory_space<vmem>>, vector<2x1x16x64xf32>
    tpu.vector_store %arg8[%c0_85, %c0_86, %c0_87, %c0_88], %94 {strides = array<i32>} : memref<2x1x16x64xf32, #tpu.memory_space<vmem>>, vector<2x1x16x64xf32>,
    return
  }
  func.func @transform_0(%arg0: i32) -> (i32, i32, i32, i32) {
    %c0_i32 = arith.constant 0 : i32
    %c0_i32_0 = arith.constant 0 : i32
    %c0_i32_1 = arith.constant 0 : i32
    %c0_i32_2 = arith.constant 0 : i32
    return %c0_i32, %arg0, %c0_i32_0, %c0_i32_1 : i32, i32, i32, i32
  }
  func.func @transform_1(%arg0: i32) -> (i32, i32, i32) {
    %c0_i32 = arith.constant 0 : i32
    %c0_i32_0 = arith.constant 0 : i32
    %c0_i32_1 = arith.constant 0 : i32
    %c0_i32_2 = arith.constant 0 : i32
    return %c0_i32, %c0_i32_0, %c0_i32_1 : i32, i32, i32
  }
  func.func @transform_2(%arg0: i32) -> (i32, i32, i32) {
    %c0_i32 = arith.constant 0 : i32
    %c0_i32_0 = arith.constant 0 : i32
    %c0_i32_1 = arith.constant 0 : i32
    %c0_i32_2 = arith.constant 0 : i32
    return %c0_i32, %c0_i32_0, %c0_i32_1 : i32, i32, i32
  }
  func.func @transform_3(%arg0: i32) -> (i32, i32, i32) {
    %c0_i32 = arith.constant 0 : i32
    %c0_i32_0 = arith.constant 0 : i32
    %c0_i32_1 = arith.constant 0 : i32
    %c0_i32_2 = arith.constant 0 : i32
    return %c0_i32, %c0_i32_0, %c0_i32_1 : i32, i32, i32
  }
  func.func @transform_4(%arg0: i32) -> (i32, i32, i32) {
    %c0_i32 = arith.constant 0 : i32
    %c0_i32_0 = arith.constant 0 : i32
    %c0_i32_1 = arith.constant 0 : i32
    %c0_i32_2 = arith.constant 0 : i32
    return %c0_i32, %c0_i32_0, %c0_i32_1 : i32, i32, i32
  }
  func.func @transform_5(%arg0: i32) -> (i32, i32) {
    %c0_i32 = arith.constant 0 : i32
    %c0_i32_0 = arith.constant 0 : i32
    %c0_i32_1 = arith.constant 0 : i32
    return %c0_i32, %c0_i32_0 : i32, i32
  }
  func.func @transform_6(%arg0: i32) -> (i32, i32) {
    %c0_i32 = arith.constant 0 : i32
    %c0_i32_0 = arith.constant 0 : i32
    %c0_i32_1 = arith.constant 0 : i32
    return %c0_i32, %c0_i32_0 : i32, i32
  }
  func.func @transform_7(%arg0: i32) -> (i32, i32, i32, i32) {
    %c0_i32 = arith.constant 0 : i32
    %c0_i32_0 = arith.constant 0 : i32
    %c0_i32_1 = arith.constant 0 : i32
    %c0_i32_2 = arith.constant 0 : i32
    return %c0_i32, %arg0, %c0_i32_0, %c0_i32_1 : i32, i32, i32, i32
  }
}

</mosaic_0001>

<bundles_post_ra>
// kernel: _lambda_.2
= control target key start
LH: loop header
LB: loop body
LE: loop exit
PB: predicated region body
PF: predicated region fallthrough
CT: control target
= control target key end

     0   :  { %s1334_s15 = smov 0   ;;  %s1632_s0 = inlined_call_operand.vmem [shape: bf16[6,16,128], index: 0, kind: input, shape index: {}]   ;;  %s1633_s1 = inlined_call_operand.vmem [shape: bf16[3,128,128], index: 1, kind: input, shape index: {}]   ;;  %s1634_s2 = inlined_call_operand.vmem [shape: f32[1,128], index: 2, kind: input, shape index: {}]   ;;  %s1635_s3 = inlined_call_operand.vmem [shape: f32[6,16,64], index: 3, kind: output, shape index: {0}]   ;;  %s1636_s4 = inlined_call_operand.vmem [shape: bf16[6,16,64], index: 4, kind: output, shape index: {1}]  }
   0x1 LB: > { %s1030_s16 = sadd.s32 4294967295, %s1304_s15   ;;  %p1034_p0 = scmp.ge.s32.totalorder %s1304_s15, 1  ;;  %s1304_s15 = sphi %s1334_s15, %s15_s15  }
   0x2   : > { %p167_p1 = scmp.lt.s32.totalorder %s1304_s15, 3 }
   0x4   : > { %p168_p2 = pnand %p1034_p0, %p167_p1 }
   0x5   : > { %v1271_v0 = vld [vmem:[%s1633_s1 + $0x40] sm:$0xff] (!%p168_p2)   ;;  %v1306_v1 = vmov (!%p168_p2), 0.0   ;;  %v1273_v3 = vld [vmem:[%s1633_s1 + $0x48] sm:$0xff] (!%p168_p2)   ;;  %vm1307_vm0 = vmmov (!%p168_p2), 0   ;;  %s201_s23 = smul.u32 (!%p168_p2), 3, %s1030_s16  ;;  %v1275_v5 = vld [vmem:[%s1633_s1 + $0x50] sm:$0xff] (!%p168_p2)  }
   0x6   : > { %171 = sbr.rel (%p168_p2) target bundleno = 420 (0x1a4), region = 32  ;;  %1160 = vmatprep.subr.bf16.mxu0 (!%p168_p2), %v1306_v1  ;;  %1188 = vmatprep.subr.bf16.mxu1 (!%p168_p2), %v1306_v1  ;;  %v1272_v2 = vld [vmem:[%s1633_s1] sm:$0xff] (!%p168_p2)   ;;  %v1274_v4 = vld [vmem:[%s1633_s1 + $0x8] sm:$0xff] (!%p168_p2)   ;;  %v1276_v6 = vld [vmem:[%s1633_s1 + $0x10] sm:$0xff] (!%p168_p2)   ;;  %vm223_vm1 = vcmask (!%p168_p2), 1040384   ;;  %vm314_vm8 = vcmask (!%p168_p2), 1043456  }
   0x7   : > { %1161 = vmatpush3.bf16.msra.mxu0 (!%p168_p2), %v1271_v0  ;;  %1204 = vmatprep.mubr.msk.bf16.mxu1 (!%p168_p2), %vm1307_vm0, %v1306_v1  ;;  %p202_p3 = scmp.lt.s32.totalorder (!%p168_p2), %s201_s23, 5  ;;  %v1277_v7 = vld [vmem:[%s1633_s1 + $0x58] sm:$0xff] (!%p168_p2)   ;;  %v1279_v9 = vld [vmem:[%s1633_s1 + $0x60] sm:$0xff] (!%p168_p2)   ;;  %vm224_vm2 = vsmask.f32 (!%p168_p2), 256  ;;  %v1281_v15 = vld [vmem:[%s1633_s1 + $0x68] sm:$0xff] (!%p168_p2)  }
   0x8   : > { %1189 = vmatpush3.bf16.msra.mxu1 (!%p168_p2), %v1272_v2  ;;  %1162 = vmatprep.subr.bf16.mxu0 (!%p168_p2), %v1306_v1  ;;  %v1278_v8 = vld [vmem:[%s1633_s1 + $0x18] sm:$0xff] (!%p168_p2)   ;;  %v1280_v10 = vld [vmem:[%s1633_s1 + $0x20] sm:$0xff] (!%p168_p2)   ;;  %vm235_vm3 = vsmask.f32 (!%p168_p2), 7938  ;;  %vm1398_vm4 = vmand (!%p168_p2), %vm223_vm1, %vm224_vm2  ;;  %vm252_vm5 = vsmask.f32 (!%p168_p2), 4368 }
   0x9   : > { %1190 = vmatprep.subr.bf16.mxu1 (!%p168_p2), %v1306_v1  ;;  %1176 = vmatprep.mubr.msk.bf16.mxu0 (!%p168_p2), %vm1307_vm0, %v1306_v1  ;;  %v226_v11 = vld [vmem:[#allocation2] sm:$0x1] (!%p168_p2)  ;;  %vm1411_vm6 = vmand (!%p168_p2), %vm223_vm1, %vm235_vm3  ;;  %v237_v20 = vld [vmem:[#allocation2 + $0x8] sm:$0x1] (!%p168_p2)  ;;  %vm362_vm10 = vsmask.f32 (!%p168_p2), 3328 }
   0xa   : > { %v227_v16 = vsel (!%p168_p2), %vm1398_vm4, 0, %v226_v11  ;;  %v1282_v21 = vld [vmem:[%s1633_s1 + $0x28] sm:$0xff] (!%p168_p2)   ;;  %v238_v24 = vsel (!%p168_p2), %vm1411_vm6, 0, %v237_v20  ;;  %vm1424_vm7 = vmor (!%p168_p2), %vm224_vm2, %vm252_vm5  ;;  %v1283_v28 = vld [vmem:[%s1633_s1 + $0x70] sm:$0xff] (!%p168_p2)   ;;  %vm363_vm11 = vsmask.f32 (!%p168_p2), 7440 }
   0xb   : > { %1163 = vmatpush3.bf16.msra.mxu0 (!%p168_p2), %v1273_v3  ;;  %228 = vst [vmem:[#allocation2] sm:$0x1] (!%p168_p2), %v227_v16  ;;  %239 = vst [vmem:[#allocation2 + $0x8] sm:$0x1] (!%p168_p2), %v238_v24  ;;  %v1284_v29 = vld [vmem:[%s1633_s1 + $0x30] sm:$0xff] (!%p168_p2)   ;;  %v1285_v34 = vld [vmem:[%s1633_s1 + $0x78] sm:$0xff] (!%p168_p2)  }
   0xc   : > { %1191 = vmatpush3.bf16.msra.mxu1 (!%p168_p2), %v1274_v4  ;;  %1164 = vmatprep.subr.bf16.mxu0 (!%p168_p2), %v1306_v1  ;;  %v229_v33 = vld [vmem:[#allocation2 + $0xc] sm:$0x1] (!%p168_p2)  ;;  %vm1442_vm9 = vmand (!%p168_p2), %vm314_vm8, %vm235_vm3  ;;  %v240_v46 = vld [vmem:[#allocation2 + $0x14] sm:$0x1] (!%p168_p2)  ;;  %vm703_vm13 = vcmask (!%p168_p2), 1042432   ;;  %vm704_vm14 = vcmask (!%p168_p2), 1046532  }
   0xd   : > { %s1650_s23 = smov (!%p202_p3, %s201_s23), 5  ;;  %1192 = vmatprep.subr.bf16.mxu1 %v1306_v1  ;;  %v230_v38 = vsel %vm1398_vm4, 0, %v229_v33  ;;  %v1286_v47 = vld [vmem:[%s1633_s1 + $0x38] sm:$0xff]   ;;  %v241_v52 = vsel %vm1411_vm6, 0, %v240_v46  ;;  %v243_v3 = vld [vmem:[#allocation2 + $0x20] sm:$0x1]  ;;  %vm1492_vm12 = vmor %vm362_vm10, %vm363_vm11 }
   0xe   : > { %s1118_s8 = sshll.u32 %s1650_s23, 3  ;;  %231 = vst [vmem:[#allocation2 + $0xc] sm:$0x1] %v230_v38  ;;  %242 = vst [vmem:[#allocation2 + $0x14] sm:$0x1] %v241_v52  ;;  %v1290_v37 = vld [vmem:[%s1633_s1 + $0x90] sm:$0xff]  }
   0xf   : > { %1165 = vmatpush3.bf16.msra.mxu0 %v1275_v5  ;;  %s1389_s13 = scalar_lea.vmem %s1632_s0, %s1118_s8  ;;  %v232_v54 = vld [vmem:[#allocation2 + $0x18] sm:$0x1]  ;;  %vm1566_vm15 = vmor %vm703_vm13, %vm704_vm14  ;;  %s1119_s25 = sshll.u32 %s1650_s23, 4  ;;  %vm929_vm1 = vcmask 519168  }
  0x10   : > { %1193 = vmatpush3.bf16.msra.mxu1 %v1276_v6  ;;  %1166 = vmatprep.subr.bf16.mxu0 %v1306_v1  ;;  %v246_v13 = vld [vmem:[%s1389_s13] sm:$0xf]  ;;  %v247_v14 = vld [vmem:[%s1389_s13 + $0x4] sm:$0xf]  ;;  %v248_v39 = vld [vmem:[%s1389_s13 + $0x8] sm:$0xf]  ;;  %s1604_s28 = scalar_lea.vmem %s1635_s3, %s1119_s25  ;;  %s220_s6 = scalar_lea.vmem %s1636_s4, %s1118_s8 }
  0x11   : > { %1194 = vmatprep.subr.bf16.mxu1 %v1306_v1  ;;  %v255_v18 = vshrl.u32 %v246_v13, 16  ;;  %v263_v19 = vshrl.u32 %v247_v14, 16  ;;  %v258_v22 = vshll.u32 %v246_v13, 16  ;;  %v266_v23 = vshll.u32 %v247_v14, 16  ;;  %v249_v40 = vld [vmem:[%s1389_s13 + $0xc] sm:$0xf] }
  0x12   : > { %v272_v41 = vshrl.u32 %v248_v39, 16  ;;  %v275_v42 = vshll.u32 %v248_v39, 16  ;;  %v280_v43 = vshrl.u32 %v249_v40, 16  ;;  %v283_v44 = vshll.u32 %v249_v40, 16  ;;  %v316_v45 = vld [vmem:[#allocation2] sm:$0xf] }
  0x13   : > { %1167 = vmatpush3.bf16.msra.mxu0 %v1277_v7  ;;  %v257_v25 = vrot.slane %v255_v18, 7  ;;  %v265_v26 = vrot.slane %v263_v19, 7  ;;  %v320_v49 = vld [vmem:[#allocation2 + $0x8] sm:$0x1]  ;;  %v250_v58 = vld [vmem:[%s1389_s13 + $0x10] sm:$0xf] }
  0x14   : > { %1195 = vmatpush3.bf16.msra.mxu1 %v1278_v8  ;;  %1168 = vmatprep.subr.bf16.mxu0 %v1306_v1  ;;  %v274_v50 = vrot.slane %v272_v41, 7  ;;  %v282_v51 = vrot.slane %v280_v43, 7  ;;  %v251_v59 = vld [vmem:[%s1389_s13 + $0x14] sm:$0xf]  ;;  %v233_v60 = vsel %vm1398_vm4, 0, %v232_v54  ;;  %v289_v61 = vshrl.u32 %v250_v58, 16 }
  0x15   : > { %1196 = vmatprep.subr.bf16.mxu1 %v1306_v1  ;;  %v261_v30 = vrot.slane %v257_v25, 4  ;;  %v268_v31 = vor.u32 %v266_v23, %v265_v26  ;;  %v260_v32 = vor.u32 %v258_v22, %v257_v25  ;;  %v270_v36 = vrot.slane %v265_v26, 4  ;;  %234 = vst [vmem:[#allocation2 + $0x18] sm:$0x1] %v233_v60  ;;  %v323_v5 = vld [vmem:[#allocation2 + $0xc] sm:$0xf] }
  0x16   : > { %v277_v55 = vor.u32 %v275_v42, %v274_v50  ;;  %v278_v56 = vrot.slane %v274_v50, 4  ;;  %v285_v57 = vor.u32 %v283_v44, %v282_v51  ;;  %v297_v62 = vshrl.u32 %v251_v59, 16  ;;  %v1478_v19 = vld [vmem:[%s1633_s1 + $0x80] sm:$0xff]   ;;  %v327_v26 = vld [vmem:[#allocation2 + $0x14] sm:$0x1]  ;;  %v1292_v12 = vld [vmem:[%s1633_s1 + $0x98] sm:$0xff]  }
  0x17   : > { %1169 = vmatpush3.bf16.msra.mxu0 %v1279_v9  ;;  %v269_v35 = vsel %vm1424_vm7, %v261_v30, %v268_v31  ;;  %v317_v48 = vsel %vm1442_vm9, %v260_v32, %v316_v45  ;;  %v321_v53 = vsel %vm1398_vm4, %v270_v36, %v320_v49  ;;  %v292_v0 = vshll.u32 %v250_v58, 16  ;;  %v1289_v36 = vld [vmem:[%s1633_s1 + $0x88] sm:$0xff]   ;;  %s1308_s29 = smov 64  }
  0x18   : > { %1197 = vmatpush3.bf16.msra.mxu1 %v1280_v10  ;;  %1170 = vmatprep.subr.bf16.mxu0 %v1306_v1  ;;  %319 = vst [vmem:[#allocation2 + $0x4] sm:$0xf] %v269_v35  ;;  %318 = vst [vmem:[#allocation2] sm:$0xf] %v317_v48  ;;  %v286_v63 = vsel %vm1424_vm7, %v278_v56, %v285_v57  ;;  %v300_v2 = vshll.u32 %v251_v59, 16  ;;  %v291_v6 = vrot.slane %v289_v61, 7 }
  0x19   : > { %1198 = vmatprep.subr.bf16.mxu1 %v1306_v1  ;;  %322 = vst [vmem:[#allocation2 + $0x8] sm:$0x1] %v321_v53  ;;  %326 = vst [vmem:[#allocation2 + $0x10] sm:$0xf] %v286_v63  ;;  %v299_v7 = vrot.slane %v297_v62, 7  ;;  %v287_v10 = vrot.slane %v282_v51, 4  ;;  %v324_v11 = vsel %vm1442_vm9, %v277_v55, %v323_v5 }
  0x1a   : > { %325 = vst [vmem:[#allocation2 + $0xc] sm:$0xf] %v324_v11  ;;  %v295_v13 = vrot.slane %v291_v6, 4  ;;  %v294_v20 = vor.u32 %v292_v0, %v291_v6 }
  0x1b   : > { %1171 = vmatpush3.bf16.msra.mxu0 %v1281_v15  ;;  %v302_v14 = vor.u32 %v300_v2, %v299_v7  ;;  %v328_v31 = vsel %vm1398_vm4, %v287_v10, %v327_v26  ;;  %v304_v43 = vrot.slane %v299_v7, 4 }
  0x1c   : > { %1199 = vmatpush3.bf16.msra.mxu1 %v1282_v21  ;;  %1172 = vmatprep.subr.bf16.mxu0 %v1306_v1  ;;  %v244_v21 = vsel %vm1411_vm6, 0, %v243_v3  ;;  %329 = vst [vmem:[#allocation2 + $0x14] sm:$0x1] %v328_v31  ;;  %v330_v27 = vld [vmem:[#allocation2 + $0x18] sm:$0xf] }
  0x1d   : > { %1200 = vmatprep.subr.bf16.mxu1 %v1306_v1  ;;  %245 = vst [vmem:[#allocation2 + $0x20] sm:$0x1] %v244_v21  ;;  %v331_v39 = vsel %vm1442_vm9, %v294_v20, %v330_v27  ;;  %v1293_v20 = vld [vmem:[%s1633_s1 + $0xa0] sm:$0xff]  }
  0x1e   : > { %332 = vst [vmem:[#allocation2 + $0x18] sm:$0xf] %v331_v39  ;;  %v1297_v39 = vld [vmem:[%s1633_s1 + $0xb8] sm:$0xff]  }
  0x1f   : > { %1173 = vmatpush3.bf16.msra.mxu0 %v1283_v28  ;;  %v1468_v4 = vld [vmem:[#allocation2 + $0x4] sm:$0xf]  ;;  %v337_v15 = vld [vmem:[#allocation2] sm:$0xf]  ;;  %v303_v28 = vsel %vm1424_vm7, %v295_v13, %v302_v14 }
  0x20   : > { %1201 = vmatpush3.bf16.msra.mxu1 %v1284_v29  ;;  %1174 = vmatprep.subr.bf16.mxu0 %v1306_v1  ;;  %v379_v8 = vshrl.u32 %v1468_v4, 16  ;;  %v375_v9 = vshll.u32 %v1468_v4, 16  ;;  %v366_v22 = vshrl.u32 %v337_v15, 16  ;;  %v369_v23 = vshll.u32 %v337_v15, 16  ;;  %v1483_v25 = vld [vmem:[#allocation2 + $0x8] sm:$0x1] }
  0x21   : > { %1202 = vmatprep.subr.bf16.mxu1 %v1306_v1  ;;  %v1068_v24 = vcombine.low %v337_v15, %v1468_v4  ;;  %v385_v30 = vshll.u32 %v1483_v25, 16  ;;  %333 = vst [vmem:[#allocation2 + $0x1c] sm:$0xf] %v303_v28  ;;  %v1502_v38 = vld [vmem:[#allocation2 + $0x10] sm:$0xf] }
  0x22   : > { %v377_v16 = vrot.slane %v375_v9, 5  ;;  %v381_v18 = vrot.slane %v379_v8, 4  ;;  %v368_v17 = vrot.slane %v366_v22, 4  ;;  %v371_v32 = vrot.slane %v369_v23, 5  ;;  %v339_v45 = vld [vmem:[#allocation2 + $0xc] sm:$0xf] }
  0x23   : > { %1175 = vmatpush3.bf16.msra.mxu0 %v1285_v34  ;;  %v387_v35 = vrot.slane %v385_v30, 5  ;;  %v403_v41 = vshrl.u32 %v1502_v38, 16  ;;  %v399_v42 = vshll.u32 %v1502_v38, 16  ;;  %v393_v48 = vshll.u32 %v339_v45, 16  ;;  %v1522_v59 = vld [vmem:[#allocation2 + $0x14] sm:$0x1] }
  0x24   : > { %1203 = vmatpush3.bf16.msra.mxu1 %v1286_v47  ;;  %1216 = vmatprep.subr.bf16.mxu0 %v1306_v1  ;;  %v382_v29 = vor.u32 %v381_v18, %v377_v16  ;;  %v372_v40 = vor.u32 %v371_v32, %v368_v17  ;;  %v390_v47 = vshrl.u32 %v339_v45, 16  ;;  %v1069_v49 = vcombine.low %v339_v45, %v1502_v38  ;;  %v334_v52 = vld [vmem:[#allocation2 + $0x20] sm:$0x1]  ;;  %v695_v17 = vld [vmem:[#allocation2 + $0xc] sm:$0xe] }
  0x25   : > { %1244 = vmatprep.subr.bf16.mxu1 %v1306_v1  ;;  %v401_v50 = vrot.slane %v399_v42, 5  ;;  %v405_v51 = vrot.slane %v403_v41, 4  ;;  %v395_v55 = vrot.slane %v393_v48, 5  ;;  %v335_v57 = vsel %vm1398_vm4, %v304_v43, %v334_v52  ;;  %v341_v3 = vld [vmem:[#allocation2 + $0x18] sm:$0xf] }
  0x26   : > { %v383_v34 = vrot.slane %v382_v29, 4  ;;  %v373_v46 = vrot.slane %v372_v40, 4  ;;  %v392_v54 = vrot.slane %v390_v47, 4  ;;  %336 = vst [vmem:[#allocation2 + $0x20] sm:$0x1] %v335_v57  ;;  %v409_v0 = vshll.u32 %v1522_v59, 16 }
  0x27   : > { %1205 = vmatmul.mubr.bf16.vlgmr.msra.gmra.mrb[0].mxu1 %v1068_v24  ;;  %v406_v60 = vor.u32 %v405_v51, %v401_v50  ;;  %v414_v9 = vshrl.u32 %v341_v3, 16  ;;  %v417_v10 = vshll.u32 %v341_v3, 16  ;;  %v715_v28 = vrot.slane %v1502_v38, 5  ;;  %v1295_v29 = vld [vmem:[%s1633_s1 + $0xa8] sm:$0xff]   ;;  %v694_v45 = vld [vmem:[#allocation2] sm:$0xe] }
  0x28   : > { %1252 = vmatpush3.bf16.msra.mxu1 %v1478_v19  ;;  %1208 = vmatprep.mubr.msk.bf16.mxu1 %vm1307_vm0, %v1306_v1  ;;  %v388_v44 = vsel %vm1492_vm12, %v383_v34, %v387_v35  ;;  %v378_v53 = vsel %vm1492_vm12, %v373_v46, %v377_v16  ;;  %v1518_v56 = vld [vmem:[#allocation2 + $0x1c] sm:$0xf]  ;;  %v396_v63 = vor.u32 %v395_v55, %v392_v54  ;;  %v411_v8 = vrot.slane %v409_v0, 5 }
  0x29   : > { %1245 = vmatprep.subr.bf16.mxu1 %v1306_v1  ;;  %v1057_v58 = vcombine.low %v378_v53, %v388_v44  ;;  %v427_v61 = vshrl.u32 %v1518_v56, 16  ;;  %v423_v62 = vshll.u32 %v1518_v56, 16  ;;  %v407_v2 = vrot.slane %v406_v60, 4  ;;  %v696_v44 = vld [vmem:[#allocation2 + $0x18] sm:$0xe] }
  0x2a   : > { %v397_v7 = vrot.slane %v396_v63, 4  ;;  %v1070_v11 = vcombine.low %v341_v3, %v1518_v56  ;;  %v416_v16 = vrot.slane %v414_v9, 4  ;;  %v419_v18 = vrot.slane %v417_v10, 5 }
  0x2b   : > { %1177 = vmatmul.mubr.bf16.vlgmr.msra.gmra.mrb[0].mxu0 %v1057_v58  ;;  %v425_v5 = vrot.slane %v423_v62, 5  ;;  %v429_v6 = vrot.slane %v427_v61, 4  ;;  %v412_v15 = vsel %vm1492_vm12, %v407_v2, %v411_v8  ;;  %v717_v27 = vrot.slane %v715_v28, 4 }
  0x2c   : > { %1253 = vmatpush3.bf16.msra.mxu1 %v1289_v36  ;;  %1217 = vmatpush3.bf16.msra.mxu0 %v1478_v19  ;;  %v402_v14 = vsel %vm1492_vm12, %v397_v7, %v401_v50  ;;  %v420_v22 = vor.u32 %v419_v18, %v416_v16  ;;  %v718_v34 = vrot.slane %v1522_v59, 5  ;;  %v1080_v38 = vrot.slane %v695_v17, 9 }
  0x2d   : > { %1246 = vmatprep.subr.bf16.mxu1 %v1306_v1  ;;  %1218 = vmatprep.subr.bf16.mxu0 %v1306_v1  ;;  %v430_v13 = vor.u32 %v429_v6, %v425_v5  ;;  %v1058_v19 = vcombine.low %v402_v14, %v412_v15  ;;  %v361_v21 = vld [vmem:[#allocation2 + $0x20] sm:$0x1]  ;;  %v722_v42 = vrot.slane %v1518_v56, 5  ;;  %v708_v43 = vrot.slane %v1468_v4, 5 }
  0x2e   : > { %1180 = vmatprep.mubr.msk.bf16.mxu0 %vm1307_vm0, %v1306_v1  ;;  %v433_v24 = vshll.u32 %v361_v21, 16  ;;  %v421_v26 = vrot.slane %v420_v22, 4  ;;  %v716_v40 = vsel %vm1566_vm15, %v1080_v38, %v715_v28  ;;  %v719_v41 = vsel %vm1566_vm15, %v717_v27, %v718_v34 }
  0x2f   : > { %1209 = vmatmul.mubr.bf16.gmra.mrb[4].mxu1 %v1069_v49  ;;  %v431_v23 = vrot.slane %v430_v13, 4  ;;  %v1099_v46 = vcombine.low %v716_v40, %v719_v41  ;;  %v1081_v47 = vrot.slane %v696_v44, 9  ;;  %v724_v48 = vrot.slane %v722_v42, 4 }
  0x30   : > { %1254 = vmatpush3.bf16.msra.mxu1 %v1290_v37  ;;  %1212 = vmatprep.mubr.msk.bf16.mxu1 %vm1307_vm0, %v1306_v1  ;;  %v435_v30 = vrot.slane %v433_v24, 5  ;;  %v426_v31 = vsel %vm1492_vm12, %v421_v26, %v425_v5  ;;  %v725_v49 = vrot.slane %v361_v21, 5  ;;  %v711_v50 = vrot.slane %v1483_v25, 5  ;;  %v1109_v24 = vld [vmem:[%s1634_s2] ss:$0 sm:$0xff] }
  0x31   : > { %1247 = vmatprep.subr.bf16.mxu1 %v1306_v1  ;;  %1219 = vmatpush3.bf16.msra.mxu0 %v1289_v36  ;;  %v1296_v36 = vld [vmem:[%s1633_s1 + $0xb0] sm:$0xff]   ;;  %v1079_v4 = vrot.slane %v694_v45, 9  ;;  %v723_v51 = vsel %vm1566_vm15, %v1081_v47, %v722_v42 }
  0x32   : > { %1220 = vmatprep.subr.bf16.mxu0 %v1306_v1  ;;  %v436_v32 = vsel %vm1492_vm12, %v431_v23, %v435_v30  ;;  %v726_v52 = vsel %vm1566_vm15, %v724_v48, %v725_v49 }
  0x33   : > { %1181 = vmatmul.mubr.bf16.gmra.mrb[4].mxu0 %v1058_v19  ;;  %v1059_v35 = vcombine.low %v426_v31, %v436_v32  ;;  %v709_v53 = vsel %vm1566_vm15, %v1079_v4, %v708_v43  ;;  %v1100_v54 = vcombine.low %v723_v51, %v726_v52 }
  0x34   : > { %1255 = vmatpush3.bf16.msra.mxu1 %v1292_v12  ;;  %1184 = vmatprep.mubr.msk.bf16.mxu0 %vm1307_vm0, %v1306_v1 }
  0x35   : > { %1248 = vmatprep.subr.bf16.mxu1 %v1306_v1  ;;  %1221 = vmatpush3.bf16.msra.mxu0 %v1290_v37  ;;  %v710_v37 = vrot.slane %v708_v43, 4 }
  0x36   : > { %1222 = vmatprep.subr.bf16.mxu0 %v1306_v1 }
  0x37   : > { %1213 = vmatmul.mubr.bf16.gmra.mrb[8].mxu1 %v1070_v11  ;;  %v712_v25 = vsel %vm1566_vm15, %v710_v37, %v711_v50 }
  0x38   : > { %1256 = vmatpush3.bf16.msra.mxu1 %v1293_v20  ;;  %1236 = vmatprep.mubr.msk.bf16.mxu1 %vm1307_vm0, %v1306_v1  ;;  %v1098_v55 = vcombine.low %v709_v53, %v712_v25 }
  0x39   : > { %1249 = vmatprep.subr.bf16.mxu1 %v1306_v1  ;;  %1223 = vmatpush3.bf16.msra.mxu0 %v1292_v12 }
  0x3a   : > { %1224 = vmatprep.subr.bf16.mxu0 %v1306_v1 }
  0x3b   : > { %1185 = vmatmul.mubr.bf16.gmra.mrb[8].mxu0 %v1059_v35 }
  0x3c   : > { %1257 = vmatpush3.bf16.msra.mxu1 %v1295_v29  ;;  %1232 = vmatprep.mubr.msk.bf16.mxu0 %vm1307_vm0, %v1306_v1 }
  0x3d   : > { %1250 = vmatprep.subr.bf16.mxu1 %v1306_v1  ;;  %1225 = vmatpush3.bf16.msra.mxu0 %v1293_v20 }
  0x3e   : > { %1226 = vmatprep.subr.bf16.mxu0 %v1306_v1 }
  0x40   : > { %1258 = vmatpush3.bf16.msra.mxu1 %v1296_v36 }
  0x41   : > { %1251 = vmatprep.subr.bf16.mxu1 %v1306_v1  ;;  %1227 = vmatpush3.bf16.msra.mxu0 %v1295_v29 }
  0x42   : > { %1228 = vmatprep.subr.bf16.mxu0 %v1306_v1 }
  0x44   : > { %1259 = vmatpush3.bf16.msra.mxu1 %v1297_v39 }
  0x45   : > { %1229 = vmatpush3.bf16.msra.mxu0 %v1296_v36 }
  0x46   : > { %1230 = vmatprep.subr.bf16.mxu0 %v1306_v1 }
  0x47   : > { %1237 = vmatmul.mubr.bf16.vlgmr.msra.gmra.mrb[12].mxu1 %v1099_v46 }
  0x48   : > { %1240 = vmatprep.mubr.msk.bf16.mxu1 %vm1307_vm0, %v1306_v1  ;;  %vm886_vm0 = vcmask 523264  }
  0x49   : > { %1231 = vmatpush3.bf16.msra.mxu0 %v1297_v39 }
  0x4c   : > { %1233 = vmatmul.mubr.bf16.vlgmr.msra.gmra.mrb[12].mxu0 %v1098_v55 }
  0x4f   : > { %1241 = vmatmul.mubr.bf16.gmra.mrb[16].mxu1 %v1100_v54 }
  0xfa   : > { %v671_v56 = vpop.f32.mrb[0].mxu1 }
  0xfb   : > { %v1206_v57 = vpop.f32.mrb[1].mxu1 }
  0xfc   : > { %v674_v58 = vpop.f32.mrb[2].mxu1 }
  0xfd   : > { %v1207_v59 = vpop.f32.mrb[3].mxu1 }
  0xfe   : > { %v548_v61 = vpop.f32.mrb[0].mxu0 }
  0xff   : > { %v672_v63 = vadd.f32 %v671_v56, %v548_v61  ;;  %v1178_v0 = vpop.f32.mrb[1].mxu0 }
 0x100   : > { %v551_v2 = vpop.f32.mrb[2].mxu0 }
 0x101   : > { %v675_v5 = vadd.f32 %v674_v58, %v551_v2  ;;  %v1179_v6 = vpop.f32.mrb[3].mxu0 }
 0x102   : > { %v679_v60 = vpop.f32.mrb[4].mxu1 }
 0x103   : > { %v1210_v62 = vpop.f32.mrb[5].mxu1 }
 0x104   : > { %v682_v12 = vpop.f32.mrb[6].mxu1 }
 0x105   : > { %v1211_v3 = vpop.f32.mrb[7].mxu1 }
 0x106   : > { %v556_v7 = vpop.f32.mrb[4].mxu0 }
 0x107   : > { %v680_v9 = vadd.f32 %v679_v60, %v556_v7  ;;  %v1182_v10 = vpop.f32.mrb[5].mxu0 }
 0x108   : > { %v559_v13 = vpop.f32.mrb[6].mxu0 }
 0x109   : > { %v683_v15 = vadd.f32 %v682_v12, %v559_v13  ;;  %v1183_v16 = vpop.f32.mrb[7].mxu0 }
 0x10a   : > { %v687_v1 = vpop.f32.mrb[8].mxu1 }
 0x10b   : > { %v1214_v8 = vpop.f32.mrb[9].mxu1 }
 0x10c   : > { %v690_v11 = vpop.f32.mrb[10].mxu1 }
 0x10d   : > { %v1215_v14 = vpop.f32.mrb[11].mxu1 }
 0x10e   : > { %v564_v18 = vpop.f32.mrb[8].mxu0 }
 0x10f   : > { %v688_v19 = vadd.f32 %v687_v1, %v564_v18  ;;  %v1186_v20 = vpop.f32.mrb[9].mxu0 }
 0x110   : > { %v567_v21 = vpop.f32.mrb[10].mxu0 }
 0x111   : > { %v691_v22 = vadd.f32 %v690_v11, %v567_v21  ;;  %v1187_v23 = vpop.f32.mrb[11].mxu0 }
 0x11a   : > { %v846_v26 = vpop.f32.mrb[12].mxu1 }
 0x11b   : > { %v863_v28 = vadd.f32 %v846_v26, %v680_v9  ;;  %v1238_v29 = vpop.f32.mrb[13].mxu1 }
 0x11c   : > { %v849_v30 = vpop.f32.mrb[14].mxu1 }
 0x11d   : > { %v876_v31 = vadd.f32 %v1109_v24, %v863_v28  ;;  %v864_v17 = vadd.f32 %v849_v30, %v683_v15  ;;  %v1239_v32 = vpop.f32.mrb[15].mxu1 }
 0x11f   : > { %v882_v27 = vmax.f32 %v876_v31, 0.0  ;;  %v877_v34 = vadd.f32 %v1109_v24, %v864_v17  ;;  %v838_v33 = vpop.f32.mrb[12].mxu0 }
 0x120   : > { %v861_v41 = vadd.f32 %v838_v33, %v672_v63  ;;  %v1234_v42 = vpop.f32.mrb[13].mxu0 }
 0x121   : > { %889 = vst.msk [vmem:[%s1604_s28 + $0x10] sm:$0xff] %vm886_vm0, %v882_v27  ;;  %v883_v35 = vmax.f32 %v877_v34, 0.0  ;;  %v1123_v36 = vpack.c.bf16 %v882_v27, %v882_v27  ;;  %v841_v44 = vpop.f32.mrb[14].mxu0 }
 0x122   : > { %v854_v38 = vpop.f32.mrb[16].mxu1  ;;  %v874_v49 = vadd.f32 %v1109_v24, %v861_v41  ;;  %v862_v37 = vadd.f32 %v841_v44, %v675_v5  ;;  %v1235_v50 = vpop.f32.mrb[15].mxu0 }
 0x123   : > { %890 = vst.msk [vmem:[%s1604_s28 + $0x18] sm:$0xff] %vm886_vm0, %v883_v35  ;;  %v865_v39 = vadd.f32 %v854_v38, %v688_v19  ;;  %v1242_v40 = vpop.f32.mrb[17].mxu1  ;;  %915 = vrot.lane.b32.xlu1 %v1123_v36, %s1308_s29  ;;  %v1124_v48 = vpack.c.bf16 %v883_v35, %v883_v35 }
 0x124   : > { %v857_v43 = vpop.f32.mrb[18].mxu1  ;;  %v880_v52 = vmax.f32 %v874_v49, 0.0  ;;  %v875_v53 = vadd.f32 %v1109_v24, %v862_v37 }
 0x125   : > { %v878_v45 = vadd.f32 %v1109_v24, %v865_v39  ;;  %v866_v46 = vadd.f32 %v857_v43, %v691_v22  ;;  %v1243_v47 = vpop.f32.mrb[19].mxu1 }
 0x126   : > { %887 = vst.msk [vmem:[%s1604_s28] sm:$0xff] %vm886_vm0, %v880_v52  ;;  %v881_v54 = vmax.f32 %v875_v53, 0.0  ;;  %v1121_v55 = vpack.c.bf16 %v880_v52, %v880_v52 }
 0x127   : > { %v884_v4 = vmax.f32 %v878_v45, 0.0  ;;  %v879_v51 = vadd.f32 %v1109_v24, %v866_v46  ;;  %917 = vrot.lane.b32.xlu1 %v1124_v48, %s1308_s29 }
 0x128   : > { %888 = vst.msk [vmem:[%s1604_s28 + $0x8] sm:$0xff] %vm886_vm0, %v881_v54  ;;  %911 = vrot.lane.b32.xlu0 %v1121_v55, %s1308_s29  ;;  %v1122_v57 = vpack.c.bf16 %v881_v54, %v881_v54 }
 0x129   : > { %891 = vst.msk [vmem:[%s1604_s28 + $0x20] sm:$0xff] %vm886_vm0, %v884_v4  ;;  %v885_v25 = vmax.f32 %v879_v51, 0.0  ;;  %v1125_v58 = vpack.c.bf16 %v884_v4, %v884_v4 }
 0x12b   : > { %892 = vst.msk [vmem:[%s1604_s28 + $0x28] sm:$0xff] %vm886_vm0, %v885_v25  ;;  %v1126_v56 = vpack.c.bf16 %v885_v25, %v885_v25 }
 0x12c   : > { %913 = vrot.lane.b32.xlu0 %v1122_v57, %s1308_s29 }
 0x12d   : > { %921 = vrot.lane.b32.xlu1 %v1126_v56, %s1308_s29 }
 0x130   : > { %919 = vrot.lane.b32.xlu0 %v1125_v58, %s1308_s29 }
 0x195   : > { %v916_v59 = vpop.permute.xlu1 %915 }
 0x196   : > { %932 = vst.msk [vmem:[%s220_s6 + $0x8] sm:$0xf] %vm929_vm1, %v916_v59 }
 0x199   : > { %v918_v60 = vpop.permute.xlu1 %917 }
 0x19a   : > { %933 = vst.msk [vmem:[%s220_s6 + $0xc] sm:$0xf] %vm929_vm1, %v918_v60  ;;  %v912_v61 = vpop.permute.xlu0 %911 }
 0x19b   : > { %930 = vst.msk [vmem:[%s220_s6] sm:$0xf] %vm929_vm1, %v912_v61 }
 0x19e   : > { %v914_v63 = vpop.permute.xlu0 %913 }
 0x19f   : > { %v922_v62 = vpop.permute.xlu1 %921  ;;  %931 = vst.msk [vmem:[%s220_s6 + $0x4] sm:$0xf] %vm929_vm1, %v914_v63 }
 0x1a0   : > { %935 = vst.msk [vmem:[%s220_s6 + $0x14] sm:$0xf] %vm929_vm1, %v922_v62 }
 0x1a2   : > { %v920_v0 = vpop.permute.xlu0 %919 }
 0x1a3   : > { %934 = vst.msk [vmem:[%s220_s6 + $0x10] sm:$0xf] %vm929_vm1, %v920_v0 }
 0x1a4 PF: > { %s15_s15 = sadd.s32 1, %s1304_s15  }
 0x1a5   : > { %p12_p4 = scmp.ge.s32.totalorder %s15_s15, 4  }
 0x1a7   :  { %14 = sbr.rel (!%p12_p4) target bundleno = 1 (0x1), region = 76 }

// kernel: _lambda_.3
= control target key start
LH: loop header
LB: loop body
LE: loop exit
PB: predicated region body
PF: predicated region fallthrough
CT: control target
= control target key end

     0   :  { %s2488_s24 = smov 0   ;;  %s2490_s25 = smov 0   ;;  %s3039_s0 = inlined_call_operand.vmem [shape: bf16[2,3,16,64], index: 0, kind: input, shape index: {}]   ;;  %s3040_s1 = inlined_call_operand.vmem [shape: f32[2,16,64], index: 1, kind: input, shape index: {}]   ;;  %s3041_s2 = inlined_call_operand.vmem [shape: bf16[3,64,192], index: 2, kind: input, shape index: {}]   ;;  %s3042_s3 = inlined_call_operand.vmem [shape: bf16[3,64,128], index: 3, kind: input, shape index: {}]   ;;  %s3043_s4 = inlined_call_operand.vmem [shape: bf16[3,64,64], index: 4, kind: input, shape index: {}]   ;;  %s3044_s5 = inlined_call_operand.vmem [shape: f32[1,128], index: 5, kind: input, shape index: {}]   ;;  %s3045_s6 = inlined_call_operand.vmem [shape: f32[1,64], index: 6, kind: input, shape index: {}]   ;;  %s3046_s7 = inlined_call_operand.vmem [shape: f32[2,3,16,64], index: 7, kind: output, shape index: {}]  }
   0x1   :  { %s2492_s26 = smov 0  }
   0x2 LB: > { %s2501_s27 = sadd.s32 4294967295, %s2444_s26   ;;  %s2503_s28 = sadd.s32 1, %s2444_s26   ;;  %s2444_s26 = sphi %s2492_s26, %s3064_s26   ;;  %s2440_s25 = sphi %s2490_s25, %s3063_s25   ;;  %s2436_s24 = sphi %s2488_s24, %s3062_s24  }
   0x3   : > { %s21_s29 = ssub.s32 %s2444_s26, %s2503_s28  ;;  %s24_s30 = sadd.s32 1, %s2440_s25 }
   0x4   : > { %p22_p0 = scmp.eq.s32.totalorder %s21_s29, 0  ;;  %p31_p1 = scmp.ne.s32.totalorder %s2440_s25, %s2436_s24 }
   0x5   : > { %p32_p2 = scmp.eq.s32.totalorder %s2444_s26, 0  ;;  %p187_p3 = scmp.eq.s32.totalorder %s2501_s27, 2 }
   0x6   : > { %s2511_s8 = scalar_select %p22_p0, %s2440_s25, %s24_s30  }
   0x7   : > { %p33_p4 = por %p32_p2, %p31_p1  ;;  %p2513_p5 = por %p187_p3, %p31_p1 }
   0x8   : > { %p2002_p6 = scmp.ge.s32.totalorder %s2444_s26, 3 }
   0xa   : > { %227 = sbr.rel (%p2002_p6) target bundleno = 24 (0x18), region = 40 }
  0x11   : > { %230 = sbr.rel (!%p33_p4) target bundleno = 24 (0x18), region = 44  ;;  %s232_s10 = sand.u32 (%p33_p4), 1, %s2440_s25  }
  0x12   : > { %s2167_s11 = sshll.u32 (%p33_p4), %s2444_s26, 3  ;;  %s2003_s12 = sshll.u32 (%p33_p4), %s232_s10, 4 }
  0x13   : > { %s237_s15 = scalar_lea.vmem (%p33_p4), %s3039_s0, %s2167_s11  ;;  %s234_s16 = scalar_lea.vmem (%p33_p4), [#allocation6], %s2003_s12 }
  0x14   : > { %v253_v0 = vld [vmem:[%s237_s15] sm:$0xff] (%p33_p4)   ;;  %v257_v1 = vld [vmem:[%s237_s15 + $0x18] sm:$0xff] (%p33_p4)  }
  0x15   : > { %254 = vst [vmem:[%s234_s16] sm:$0xff] (%p33_p4), %v253_v0   ;;  %258 = vst [vmem:[%s234_s16 + $0x8] sm:$0xff] (%p33_p4), %v257_v1  }
  0x18 PF: > { %p2006_p7 = scmp.ge.s32.totalorder %s2444_s26, 1  ;;  %p290_p8 = scmp.lt.s32.totalorder %s2444_s26, 4 }
  0x1a   : > { %p291_p9 = pnand %p2006_p7, %p290_p8 }
  0x1b   : > { %s297_s17 = sand.u32 (!%p291_p9), 1, %s2436_s24   ;;  %p2009_p10 = scmp.ne.s32.totalorder (!%p291_p9), %s2501_s27, 0 }
  0x1c   : > { %294 = sbr.rel (%p291_p9) target bundleno = 889 (0x379), region = 85  ;;  %s2007_s18 = sshll.u32 (!%p291_p9), %s297_s17, 4 }
  0x1d   : > { %s2008_s19 = sshll.u32 (!%p291_p9), %s297_s17, 5  ;;  %s2522_s20 = scalar_lea.vmem (!%p291_p9), [#allocation6], %s2007_s18 }
  0x1e   : > { %s2524_s21 = scalar_lea.vmem (!%p291_p9), [#allocation7], %s2008_s19 }
  0x23   : > { %331 = sbr.rel (%p2009_p10) target bundleno = 48 (0x30), region = 93  ;;  %v332_v2 = vld [vmem:[%s3040_s1] sm:$0xff] (!%p2009_p10)  ;;  %vm336_vm0 = vcmask (!%p2009_p10), 523264   ;;  %v333_v3 = vld [vmem:[%s3040_s1 + $0x8] sm:$0xff] (!%p2009_p10)  ;;  %v334_v4 = vld [vmem:[%s3040_s1 + $0x10] sm:$0xff] (!%p2009_p10)  ;;  %vm341_vm1 = vcmask (!%p2009_p10), 516096  }
  0x24   : > { %337 = vst.msk [vmem:[#allocation2] sm:$0xff] (!%p2009_p10), %vm336_vm0, %v332_v2  ;;  %338 = vst.msk [vmem:[#allocation2 + $0x8] sm:$0xff] (!%p2009_p10), %vm336_vm0, %v333_v3  ;;  %v335_v5 = vld [vmem:[%s3040_s1 + $0x18] sm:$0xff] (!%p2009_p10)  ;;  %vm342_vm2 = vsmask.f32 (!%p2009_p10), 256 }
  0x25   : > { %339 = vst.msk [vmem:[#allocation2 + $0x10] sm:$0xff] (!%p2009_p10), %vm336_vm0, %v334_v4  ;;  %v344_v6 = vld [vmem:[#allocation3] sm:$0x1] (!%p2009_p10)  ;;  %340 = vst.msk [vmem:[#allocation2 + $0x18] sm:$0xff] (!%p2009_p10), %vm336_vm0, %v335_v5  ;;  %v347_v8 = vld [vmem:[#allocation3 + $0xc] sm:$0x1] (!%p2009_p10) }
  0x26   : > { %vm2539_vm3 = vmand (!%p2009_p10), %vm341_vm1, %vm342_vm2  ;;  %vm350_vm4 = vsmask.f32 (!%p2009_p10), 7938  ;;  %v352_v9 = vld [vmem:[#allocation3 + $0x8] sm:$0x1] (!%p2009_p10)  ;;  %v355_v13 = vld [vmem:[#allocation3 + $0x14] sm:$0x1] (!%p2009_p10) }
  0x27   : > { %v345_v10 = vsel (!%p2009_p10), %vm2539_vm3, 0, %v344_v6  ;;  %v348_v11 = vsel (!%p2009_p10), %vm2539_vm3, 0, %v347_v8  ;;  %vm2547_vm5 = vmand (!%p2009_p10), %vm341_vm1, %vm350_vm4  ;;  %v358_v14 = vld [vmem:[#allocation4] sm:$0x1] (!%p2009_p10)  ;;  %v361_v18 = vld [vmem:[#allocation4 + $0xc] sm:$0x1] (!%p2009_p10) }
  0x28   : > { %346 = vst [vmem:[#allocation3] sm:$0x1] (!%p2009_p10), %v345_v10  ;;  %349 = vst [vmem:[#allocation3 + $0xc] sm:$0x1] (!%p2009_p10), %v348_v11  ;;  %v353_v15 = vsel (!%p2009_p10), %vm2547_vm5, 0, %v352_v9  ;;  %v356_v16 = vsel (!%p2009_p10), %vm2547_vm5, 0, %v355_v13 }
  0x29   : > { %v359_v17 = vsel (!%p2009_p10), %vm2539_vm3, 0, %v358_v14  ;;  %354 = vst [vmem:[#allocation3 + $0x8] sm:$0x1] (!%p2009_p10), %v353_v15  ;;  %357 = vst [vmem:[#allocation3 + $0x14] sm:$0x1] (!%p2009_p10), %v356_v16  ;;  %v362_v19 = vsel (!%p2009_p10), %vm2539_vm3, 0, %v361_v18 }
  0x2a   : > { %360 = vst [vmem:[#allocation4] sm:$0x1] %v359_v17  ;;  %v364_v20 = vld [vmem:[#allocation4 + $0x8] sm:$0x1]  ;;  %v367_v21 = vld [vmem:[#allocation4 + $0x14] sm:$0x1] }
  0x2b   : > { %363 = vst [vmem:[#allocation4 + $0xc] sm:$0x1] %v362_v19  ;;  %v365_v22 = vsel %vm2547_vm5, 0, %v364_v20  ;;  %v368_v23 = vsel %vm2547_vm5, 0, %v367_v21  ;;  %v370_v24 = vld [vmem:[#allocation5] sm:$0x1] }
  0x2c   : > { %v373_v25 = vld [vmem:[#allocation5 + $0xc] sm:$0x1]  ;;  %366 = vst [vmem:[#allocation4 + $0x8] sm:$0x1] %v365_v22  ;;  %369 = vst [vmem:[#allocation4 + $0x14] sm:$0x1] %v368_v23 }
  0x2d   : > { %v371_v26 = vsel %vm2539_vm3, 0, %v370_v24  ;;  %v374_v27 = vsel %vm2539_vm3, 0, %v373_v25  ;;  %v376_v28 = vld [vmem:[#allocation5 + $0x8] sm:$0x1]  ;;  %v379_v29 = vld [vmem:[#allocation5 + $0x14] sm:$0x1] }
  0x2e   : > { %372 = vst [vmem:[#allocation5] sm:$0x1] %v371_v26  ;;  %375 = vst [vmem:[#allocation5 + $0xc] sm:$0x1] %v374_v27  ;;  %v377_v30 = vsel %vm2547_vm5, 0, %v376_v28  ;;  %v380_v31 = vsel %vm2547_vm5, 0, %v379_v29 }
  0x2f   : > { %378 = vst [vmem:[#allocation5 + $0x8] sm:$0x1] %v377_v30  ;;  %381 = vst [vmem:[#allocation5 + $0x14] sm:$0x1] %v380_v31 }
  0x30 PF: > { %v2335_v32 = vld [vmem:[%s3041_s2 + $0x44] ss:$8 sps:$4 sm:$0xff]   ;;  %v2337_v33 = vld [vmem:[%s3041_s2 + $0x40] ss:$8 sps:$4 sm:$0xff]   ;;  %v2446_v34 = vmov 0   ;;  %v2346_v40 = vld [vmem:[%s3042_s3 + $0x30] sm:$0xff]  }
  0x31   : > { %740 = vmatprep.mubr.bf16.mxu0 %v2446_v34  ;;  %708 = vmatprep.subr.bf16.mxu0 %v2335_v32  ;;  %v2338_v35 = vld [vmem:[%s3042_s3 + $0x20] sm:$0xff]   ;;  %v2339_v36 = vld [vmem:[%s3041_s2 + $0x54] ss:$8 sps:$4 sm:$0xff]   ;;  %v2341_v37 = vld [vmem:[%s3041_s2 + $0x50] ss:$8 sps:$4 sm:$0xff]   ;;  %vm433_vm6 = vcmask 519168  }
  0x32   : > { %709 = vmatpush1.bf16.msra.mxu0 %v2337_v33  ;;  %2213 = vmatprep.subr.bf16.mxu1 %v2338_v35  ;;  %v2342_v38 = vld [vmem:[%s3042_s3 + $0x28] sm:$0xff]   ;;  %v2347_v42 = vld [vmem:[%s3041_s2 + $0x74] ss:$8 sps:$4 sm:$0xff]   ;;  %vm390_vm7 = vsmask.f32 256  ;;  %vm441_vm10 = vcmask 516096  }
  0x33   : > { %710 = vmatprep.subr.bf16.mxu0 %v2339_v36  ;;  %2214 = vmatpush3.bf16.msra.mxu1 %v2338_v35  ;;  %v2343_v39 = vld [vmem:[%s3041_s2 + $0x64] ss:$8 sps:$4 sm:$0xff]   ;;  %v2345_v41 = vld [vmem:[%s3041_s2 + $0x60] ss:$8 sps:$4 sm:$0xff]   ;;  %vm391_vm8 = vsmask.f32 4368  ;;  %vm2629_vm13 = vmand %vm441_vm10, %vm390_vm7 }
  0x34   : > { %2215 = vmatprep.subr.bf16.mxu1 %v2342_v38  ;;  %v2350_v43 = vld [vmem:[%s3042_s3 + $0x38] sm:$0xff]   ;;  %vm434_vm9 = vsmask.f32 7938  ;;  %v2353_v49 = vld [vmem:[%s3041_s2 + $0x4] ss:$8 sps:$4 sm:$0xff]   ;;  %vm2614_vm11 = vmor %vm390_vm7, %vm391_vm8  ;;  %s2447_s29 = smov 64  }
  0x35   : > { %v386_v44 = vld [vmem:[%s2522_s20] sm:$0xf]  ;;  %v387_v46 = vld [vmem:[%s2522_s20 + $0x4] sm:$0xf]  ;;  %vm2619_vm12 = vmand %vm433_vm6, %vm434_vm9  ;;  %vm545_vm14 = vsmask.f32 3328 }
  0x36   : > { %711 = vmatpush1.bf16.msra.mxu0 %v2341_v37  ;;  %v2349_v45 = vld [vmem:[%s3041_s2 + $0x70] ss:$8 sps:$4 sm:$0xff]   ;;  %v394_v47 = vshrl.u32 %v386_v44, 16  ;;  %v397_v48 = vshll.u32 %v386_v44, 16  ;;  %v402_v51 = vshrl.u32 %v387_v46, 16  ;;  %v405_v52 = vshll.u32 %v387_v46, 16 }
  0x37   : > { %712 = vmatprep.subr.bf16.mxu0 %v2343_v39  ;;  %2216 = vmatpush3.bf16.msra.mxu1 %v2342_v38  ;;  %v2623_v55 = vld [vmem:[#allocation2] sm:$0xff]  ;;  %v2625_v56 = vld [vmem:[#allocation2 + $0x8] sm:$0xff]  ;;  %v2644_v6 = vld [vmem:[#allocation2 + $0x10] sm:$0xff]  ;;  %vm546_vm15 = vsmask.f32 7440  ;;  %vm701_vm0 = vcmask 523264  }
  0x38   : > { %2217 = vmatprep.subr.bf16.mxu1 %v2346_v40  ;;  %v396_v53 = vrot.slane %v394_v47, 7  ;;  %v404_v57 = vrot.slane %v402_v51, 7  ;;  %v436_v58 = vld [vmem:[#allocation3] sm:$0xf]  ;;  %v443_v60 = vld [vmem:[#allocation3 + $0x8] sm:$0x1]  ;;  %v2168_v61 = vpack.c.bf16 %v2623_v55, %v2623_v55  ;;  %v2169_v62 = vpack.c.bf16 %v2625_v56, %v2625_v56  ;;  %1825 = vrot.lane.b32.xlu0 %v2623_v55, %s2447_s29  ;;  %vm2699_vm1 = vmor %vm545_vm14, %vm546_vm15 }
  0x39   : > { %v2642_v1 = vld [vmem:[%s3042_s3] sm:$0xff]   ;;  %v2646_v7 = vld [vmem:[#allocation2 + $0x18] sm:$0xff]  ;;  %v2170_v11 = vpack.c.bf16 %v2644_v6, %v2644_v6  ;;  %1829 = vrot.lane.b32.xlu1 %v2644_v6, %s2447_s29  ;;  %v516_v37 = vld [vmem:[#allocation4 + $0x14] sm:$0x1]  ;;  %vm1059_vm2 = vcmask 1042432   ;;  %vm1060_vm3 = vcmask 1046532  }
  0x3a   : > { %713 = vmatpush1.bf16.msra.mxu0 %v2345_v41  ;;  %v399_v63 = vor.u32 %v397_v48, %v396_v53  ;;  %v400_v0 = vrot.slane %v396_v53, 4  ;;  %v407_v2 = vor.u32 %v405_v52, %v404_v57  ;;  %v409_v3 = vrot.slane %v404_v57, 4  ;;  %v505_v15 = vld [vmem:[#allocation4] sm:$0xf]  ;;  %v509_v16 = vld [vmem:[#allocation4 + $0x8] sm:$0x1]  ;;  %vm2800_vm4 = vmor %vm1059_vm2, %vm1060_vm3 }
  0x3b   : > { %714 = vmatprep.subr.bf16.mxu0 %v2347_v42  ;;  %2218 = vmatpush3.bf16.msra.mxu1 %v2346_v40  ;;  %v466_v4 = vshrl.u32 %v2168_v61, 16  ;;  %v469_v5 = vshll.u32 %v2168_v61, 16  ;;  %v474_v9 = vshrl.u32 %v2169_v62, 16  ;;  %v477_v10 = vshll.u32 %v2169_v62, 16  ;;  %v512_v30 = vld [vmem:[#allocation4 + $0xc] sm:$0xf] }
  0x3c   : > { %2219 = vmatprep.subr.bf16.mxu1 %v2350_v43  ;;  %v437_v8 = vsel %vm2619_vm12, %v399_v63, %v436_v58  ;;  %v408_v12 = vsel %vm2614_vm11, %v400_v0, %v407_v2  ;;  %v444_v13 = vsel %vm2629_vm13, %v409_v3, %v443_v60  ;;  %v2171_v17 = vpack.c.bf16 %v2646_v7, %v2646_v7  ;;  %v388_v31 = vld [vmem:[%s2522_s20 + $0x8] sm:$0xf]  ;;  %v389_v38 = vld [vmem:[%s2522_s20 + $0xc] sm:$0xf] }
  0x3d   : > { %438 = vst [vmem:[#allocation3] sm:$0xf] %v437_v8  ;;  %v468_v14 = vrot.slane %v466_v4, 7  ;;  %1827 = vrot.lane.b32.xlu0 %v2625_v56, %s2447_s29  ;;  %440 = vst.msk [vmem:[#allocation3 + $0x4] sm:$0xf] %vm433_vm6, %v408_v12  ;;  %v476_v18 = vrot.slane %v474_v9, 7  ;;  %1831 = vrot.lane.b32.xlu1 %v2646_v7, %s2447_s29 }
  0x3e   : > { %715 = vmatpush1.bf16.msra.mxu0 %v2349_v45  ;;  %445 = vst [vmem:[#allocation3 + $0x8] sm:$0x1] %v444_v13  ;;  %v483_v19 = vshrl.u32 %v2170_v11, 16  ;;  %v486_v20 = vshll.u32 %v2170_v11, 16  ;;  %v491_v23 = vshrl.u32 %v2171_v17, 16  ;;  %v494_v24 = vshll.u32 %v2171_v17, 16 }
  0x3f   : > { %911 = vmatprep.subr.bf16.mxu0 %v2353_v49  ;;  %2220 = vmatpush3.bf16.msra.mxu1 %v2350_v43  ;;  %v471_v21 = vor.u32 %v469_v5, %v468_v14  ;;  %v472_v22 = vrot.slane %v468_v14, 4  ;;  %v479_v25 = vor.u32 %v477_v10, %v476_v18  ;;  %v481_v26 = vrot.slane %v476_v18, 4  ;;  %v2119_v10 = vld [vmem:[%s3045_s6] ss:$0 sm:$0xff] }
  0x40   : > { %2225 = vmatprep.subr.bf16.mxu1 %v2642_v1  ;;  %v485_v27 = vrot.slane %v483_v19, 7  ;;  %v493_v29 = vrot.slane %v491_v23, 7  ;;  %v411_v41 = vshrl.u32 %v388_v31, 16  ;;  %v419_v44 = vshrl.u32 %v389_v38, 16 }
  0x41   : > { %v506_v28 = vsel %vm2619_vm12, %v471_v21, %v505_v15  ;;  %v480_v32 = vsel %vm2614_vm11, %v472_v22, %v479_v25  ;;  %v510_v33 = vsel %vm2629_vm13, %v481_v26, %v509_v16  ;;  %v414_v58 = vshll.u32 %v388_v31, 16  ;;  %v2351_v21 = vld [vmem:[%s3041_s2] ss:$8 sps:$4 sm:$0xff]  }
  0x42   : > { %507 = vst [vmem:[#allocation4] sm:$0xf] %v506_v28  ;;  %v488_v35 = vor.u32 %v486_v20, %v485_v27  ;;  %v489_v36 = vrot.slane %v485_v27, 4  ;;  %508 = vst.msk [vmem:[#allocation4 + $0x4] sm:$0xf] %vm433_vm6, %v480_v32  ;;  %v496_v39 = vor.u32 %v494_v24, %v493_v29  ;;  %v498_v40 = vrot.slane %v493_v29, 4 }
  0x43   : > { %511 = vst [vmem:[#allocation4 + $0x8] sm:$0x1] %v510_v33  ;;  %v413_v62 = vrot.slane %v411_v41, 7  ;;  %v422_v63 = vshll.u32 %v389_v38, 16  ;;  %v2693_v4 = vrot.slane %v419_v44, 7 }
  0x44   : > { %v2675_v42 = vld [vmem:[#allocation3] sm:$0xf]  ;;  %v513_v43 = vsel %vm2619_vm12, %v488_v35, %v512_v30  ;;  %v2679_v45 = vld [vmem:[#allocation3 + $0x4] sm:$0xf]  ;;  %v497_v49 = vsel %vm2614_vm11, %v489_v36, %v496_v39  ;;  %v517_v51 = vsel %vm2629_vm13, %v498_v40, %v516_v37  ;;  %v2357_v38 = vld [vmem:[%s3041_s2 + $0x14] ss:$8 sps:$4 sm:$0xff]  }
  0x45   : > { %v2681_v46 = vld [vmem:[#allocation3 + $0x8] sm:$0x1]  ;;  %v549_v47 = vshrl.u32 %v2675_v42, 16  ;;  %v552_v48 = vshll.u32 %v2675_v42, 16  ;;  %514 = vst [vmem:[#allocation4 + $0xc] sm:$0xf] %v513_v43  ;;  %v416_v16 = vor.u32 %v414_v58, %v413_v62  ;;  %v424_v26 = vor.u32 %v422_v63, %v2693_v4 }
  0x46   : > { %v558_v52 = vshll.u32 %v2679_v45, 16  ;;  %v562_v53 = vshrl.u32 %v2679_v45, 16  ;;  %v568_v57 = vshll.u32 %v2681_v46, 16  ;;  %515 = vst.msk [vmem:[#allocation4 + $0x10] sm:$0xf] %vm433_vm6, %v497_v49  ;;  %v417_v9 = vrot.slane %v413_v62, 4 }
  0x47   : > { %518 = vst [vmem:[#allocation4 + $0x14] sm:$0x1] %v517_v51  ;;  %v551_v60 = vrot.slane %v549_v47, 4  ;;  %v554_v61 = vrot.slane %v552_v48, 5  ;;  %v446_v44 = vld [vmem:[#allocation3 + $0xc] sm:$0xf] }
  0x48   : > { %v560_v0 = vrot.slane %v558_v52, 5  ;;  %v564_v2 = vrot.slane %v562_v53, 4  ;;  %v570_v3 = vrot.slane %v568_v57, 5  ;;  %v2355_v58 = vld [vmem:[%s3041_s2 + $0x10] ss:$8 sps:$4 sm:$0xff]  }
  0x49   : > { %v555_v5 = vor.u32 %v554_v61, %v551_v60  ;;  %v2695_v8 = vld [vmem:[#allocation4] sm:$0xf]  ;;  %v2703_v12 = vld [vmem:[#allocation4 + $0x4] sm:$0xf]  ;;  %v2361_v63 = vld [vmem:[%s3041_s2 + $0x24] ss:$8 sps:$4 sm:$0xff]  }
  0x4a   : > { %v565_v11 = vor.u32 %v564_v2, %v560_v0  ;;  %v2705_v13 = vld [vmem:[#allocation4 + $0x8] sm:$0x1]  ;;  %v599_v14 = vshrl.u32 %v2695_v8, 16  ;;  %v602_v15 = vshll.u32 %v2695_v8, 16  ;;  %v608_v18 = vshll.u32 %v2703_v12, 16 }
  0x4b   : > { %v556_v17 = vrot.slane %v555_v5, 4  ;;  %v612_v19 = vshrl.u32 %v2703_v12, 16  ;;  %v618_v20 = vshll.u32 %v2705_v13, 16  ;;  %v450_v2 = vld [vmem:[#allocation3 + $0x14] sm:$0x1] }
  0x4c   : > { %v566_v22 = vrot.slane %v565_v11, 4  ;;  %v601_v23 = vrot.slane %v599_v14, 4  ;;  %v604_v24 = vrot.slane %v602_v15, 5  ;;  %v2715_v25 = vld [vmem:[#allocation4 + $0xc] sm:$0xf]  ;;  %v610_v28 = vrot.slane %v608_v18, 5 }
  0x4d   : > { %v561_v27 = vsel %vm2699_vm1, %v556_v17, %v560_v0  ;;  %v614_v29 = vrot.slane %v612_v19, 4  ;;  %v620_v30 = vrot.slane %v618_v20, 5  ;;  %v2720_v31 = vld [vmem:[#allocation4 + $0x10] sm:$0xf]  ;;  %v623_v36 = vshrl.u32 %v2715_v25, 16 }
  0x4e   : > { %v571_v32 = vsel %vm2699_vm1, %v566_v22, %v570_v3  ;;  %v605_v33 = vor.u32 %v604_v24, %v601_v23  ;;  %v2724_v35 = vld [vmem:[#allocation4 + $0x14] sm:$0x1]  ;;  %v626_v37 = vshll.u32 %v2715_v25, 16  ;;  %v632_v41 = vshll.u32 %v2720_v31, 16  ;;  %v2365_v20 = vld [vmem:[%s3041_s2 + $0x34] ss:$8 sps:$4 sm:$0xff]  }
  0x4f   : > { %v2022_v39 = vcombine.low %v561_v27, %v571_v32  ;;  %v615_v40 = vor.u32 %v614_v29, %v610_v28  ;;  %v636_v43 = vshrl.u32 %v2720_v31, 16  ;;  %v625_v48 = vrot.slane %v623_v36, 4  ;;  %v2358_v22 = vld [vmem:[%s3042_s3 + $0x8] sm:$0xff]   ;;  %v2363_v24 = vld [vmem:[%s3041_s2 + $0x30] ss:$8 sps:$4 sm:$0xff]  }
  0x50   : > { %v606_v47 = vrot.slane %v605_v33, 4  ;;  %v628_v49 = vrot.slane %v626_v37, 5  ;;  %v642_v51 = vshll.u32 %v2724_v35, 16  ;;  %v634_v53 = vrot.slane %v632_v41, 5  ;;  %v2369_v27 = vld [vmem:[%s3041_s2 + $0x84] ss:$8 sps:$4 sm:$0xff]  }
  0x51   : > { %2032 = vmatmul.mubr.msk.bf16.vlgmr.msra.gmra.mrb[0].mxu0 %vm701_vm0, %v2022_v39  ;;  %v616_v52 = vrot.slane %v615_v40, 4  ;;  %v638_v57 = vrot.slane %v636_v43, 4  ;;  %v425_v0 = vsel %vm2614_vm11, %v417_v9, %v424_v26  ;;  %v426_v11 = vrot.slane %v2693_v4, 4  ;;  %v2359_v9 = vld [vmem:[%s3041_s2 + $0x20] ss:$8 sps:$4 sm:$0xff]  }
  0x52   : > { %912 = vmatpush1.bf16.msra.mxu0 %v2351_v21  ;;  %v611_v60 = vsel %vm2699_vm1, %v606_v47, %v610_v28  ;;  %v629_v61 = vor.u32 %v628_v49, %v625_v48  ;;  %v644_v62 = vrot.slane %v642_v51, 5  ;;  %750 = vmatprep.mubr.bf16.mxu0 %v2446_v34  ;;  %v447_v14 = vsel %vm2619_vm12, %v416_v16, %v446_v44 }
  0x53   : > { %v621_v3 = vsel %vm2699_vm1, %v616_v52, %v620_v30  ;;  %v639_v5 = vor.u32 %v638_v57, %v634_v53  ;;  %913 = vmatprep.subr.bf16.mxu0 %v2357_v38  ;;  %449 = vst.msk [vmem:[#allocation3 + $0x10] sm:$0xf] %vm433_vm6, %v425_v0  ;;  %448 = vst [vmem:[#allocation3 + $0xc] sm:$0xf] %v447_v14  ;;  %v451_v19 = vsel %vm2629_vm13, %v426_v11, %v450_v2  ;;  %v2362_v30 = vld [vmem:[%s3042_s3 + $0x10] sm:$0xff]  }
  0x54   : > { %v2042_v15 = vcombine.low %v611_v60, %v621_v3  ;;  %v630_v17 = vrot.slane %v629_v61, 4  ;;  %452 = vst [vmem:[#allocation3 + $0x14] sm:$0x1] %v451_v19  ;;  %v2062_v23 = vcombine.low %v2695_v8, %v2703_v12  ;;  %v1084_v32 = vrot.slane %v2703_v12, 5  ;;  %v2366_v12 = vld [vmem:[%s3042_s3 + $0x18] sm:$0xff]  }
  0x55   : > { %v640_v18 = vrot.slane %v639_v5, 4  ;;  %v1087_v44 = vrot.slane %v2705_v13, 5  ;;  %v2370_v13 = vld [vmem:[%s3042_s3 + $0x40] sm:$0xff]   ;;  %v2063_v2 = vcombine.low %v2715_v25, %v2720_v31  ;;  %v2374_v5 = vld [vmem:[%s3042_s3 + $0x48] sm:$0xff]   ;;  %v2050_v11 = vcombine.low %v2675_v42, %v2679_v45 }
  0x56   : > { %2221 = vmatprep.mubr.msk.bf16.mxu1 %vm701_vm0, %v2042_v15  ;;  %v635_v4 = vsel %vm2699_vm1, %v630_v17, %v634_v53  ;;  %914 = vmatpush1.bf16.msra.mxu0 %v2355_v58  ;;  %v1086_v48 = vrot.slane %v1084_v32, 4  ;;  %v1091_v25 = vrot.slane %v2720_v31, 5  ;;  %v2367_v14 = vld [vmem:[%s3041_s2 + $0x80] ss:$8 sps:$4 sm:$0xff]   ;;  %v1077_v15 = vld [vmem:[#allocation4 + $0xc] sm:$0xe] }
  0x57   : > { %v645_v16 = vsel %vm2699_vm1, %v640_v18, %v644_v62  ;;  %915 = vmatprep.subr.bf16.mxu0 %v2361_v63  ;;  %v2373_v17 = vld [vmem:[%s3041_s2 + $0x94] ss:$8 sps:$4 sm:$0xff]   ;;  %v1094_v42 = vrot.slane %v2724_v35, 5  ;;  %v2073_v31 = vrot.slane %v1077_v15, 9  ;;  %v1064_v19 = vrot.slane %v2679_v45, 5 }
  0x58   : > { %v2043_v21 = vcombine.low %v635_v4, %v645_v16  ;;  %v1088_v63 = vsel %vm2800_vm4, %v1086_v48, %v1087_v44  ;;  %v2379_v18 = vld [vmem:[%s3042_s3 + $0x50] sm:$0xff]   ;;  %v2383_v16 = vld [vmem:[%s3042_s3 + $0x58] sm:$0xff]   ;;  %v2377_v35 = vld [vmem:[%s3041_s2 + $0xa4] ss:$8 sps:$4 sm:$0xff]  }
  0x59   : > { %v2371_v4 = vld [vmem:[%s3041_s2 + $0x90] ss:$8 sps:$4 sm:$0xff]   ;;  %v2387_v44 = vld [vmem:[%s3043_s4 + $0x20] sm:$0xff]   ;;  %v2390_v48 = vld [vmem:[%s3043_s4 + $0x28] sm:$0xff]  }
  0x5a   : > { %2222 = vmatmul.mubr.msk.bf16.vlgmr.msra.gmra.mrb[0].mxu1 %vm701_vm0, %v2043_v21  ;;  %v2774_v26 = vld [vmem:[#allocation3 + $0x10] sm:$0xf]  ;;  %916 = vmatpush1.bf16.msra.mxu0 %v2359_v9  ;;  %v2780_v28 = vld [vmem:[#allocation3 + $0xc] sm:$0xf]  ;;  %v1093_v9 = vrot.slane %v1091_v25, 4  ;;  %v1092_v21 = vsel %vm2800_vm4, %v2073_v31, %v1091_v25 }
  0x5b   : > { %2226 = vmatpush3.bf16.msra.mxu1 %v2642_v1  ;;  %v582_v8 = vshll.u32 %v2774_v26, 16  ;;  %v586_v29 = vshrl.u32 %v2774_v26, 16  ;;  %917 = vmatprep.subr.bf16.mxu0 %v2365_v20  ;;  %v573_v33 = vshrl.u32 %v2780_v28, 16  ;;  %v576_v36 = vshll.u32 %v2780_v28, 16  ;;  %v1076_v1 = vld [vmem:[#allocation4] sm:$0xe] }
  0x5c   : > { %2227 = vmatprep.subr.bf16.mxu1 %v2358_v22  ;;  %2233 = vmatprep.mubr.msk.bf16.mxu1 %vm701_vm0, %v2062_v23  ;;  %v2791_v37 = vld [vmem:[#allocation3 + $0x14] sm:$0x1]  ;;  %v2072_v52 = vrot.slane %v1076_v1, 9  ;;  %v1053_v20 = vld [vmem:[#allocation3] sm:$0xe]  ;;  %v2051_v45 = vcombine.low %v2780_v28, %v2774_v26  ;;  %v1067_v23 = vrot.slane %v2681_v46, 5 }
  0x5d   : > { %v584_v38 = vrot.slane %v582_v8, 5  ;;  %v588_v39 = vrot.slane %v586_v29, 4  ;;  %v575_v40 = vrot.slane %v573_v33, 4  ;;  %v578_v41 = vrot.slane %v576_v36, 5  ;;  %v2382_v28 = vld [vmem:[%s3041_s2 + $0xb4] ss:$8 sps:$4 sm:$0xff]  }
  0x5e   : > { %v592_v43 = vshll.u32 %v2791_v37, 16  ;;  %918 = vmatpush1.bf16.msra.mxu0 %v2363_v24  ;;  %v1085_v62 = vsel %vm2800_vm4, %v2072_v52, %v1084_v32  ;;  %v2375_v24 = vld [vmem:[%s3041_s2 + $0xa0] ss:$8 sps:$4 sm:$0xff]   ;;  %v1066_v8 = vrot.slane %v1064_v19, 4  ;;  %v2380_v46 = vld [vmem:[%s3041_s2 + $0xb0] ss:$8 sps:$4 sm:$0xff]  }
  0x5f   : > { %2228 = vmatpush3.bf16.msra.mxu1 %v2358_v22  ;;  %v589_v47 = vor.u32 %v588_v39, %v584_v38  ;;  %1157 = vmatprep.subr.bf16.mxu0 %v2369_v27  ;;  %v579_v49 = vor.u32 %v578_v41, %v575_v40  ;;  %v2102_v3 = vcombine.low %v1085_v62, %v1088_v63  ;;  %v2070_v27 = vrot.slane %v1053_v20, 9  ;;  %v1054_v36 = vld [vmem:[#allocation3 + $0xc] sm:$0xe]  ;;  %v2395_v52 = vld [vmem:[%s3043_s4 + $0x38] sm:$0xff]   ;;  %v2110_v62 = vld [vmem:[%s3044_s5] ss:$0 sm:$0xff] }
  0x60   : > { %v594_v51 = vrot.slane %v592_v43, 5  ;;  %2229 = vmatprep.subr.bf16.mxu1 %v2362_v30  ;;  %v1095_v22 = vsel %vm2800_vm4, %v1093_v9, %v1094_v42  ;;  %v1068_v32 = vsel %vm2800_vm4, %v1066_v8, %v1067_v23  ;;  %v1071_v33 = vrot.slane %v2774_v26, 5 }
  0x61   : > { %v590_v53 = vrot.slane %v589_v47, 4  ;;  %v580_v58 = vrot.slane %v579_v49, 4  ;;  %v2103_v29 = vcombine.low %v1092_v21, %v1095_v22  ;;  %v1074_v40 = vrot.slane %v2791_v37, 5  ;;  %v2385_v37 = vld [vmem:[%s3043_s4 + $0x8] sm:$0xff]   ;;  %v2388_v47 = vld [vmem:[%s3043_s4 + $0x18] sm:$0xff]   ;;  %v2902_v49 = vld [vmem:[%s3043_s4 + $0x40] sm:$0xff]  }
  0x62   : > { %v1073_v39 = vrot.slane %v1071_v33, 4 }
  0x63   : > { %v595_v60 = vsel %vm2699_vm1, %v590_v53, %v594_v51  ;;  %2230 = vmatpush3.bf16.msra.mxu1 %v2362_v30  ;;  %v585_v61 = vsel %vm2699_vm1, %v580_v58, %v584_v38  ;;  %v1065_v30 = vsel %vm2800_vm4, %v2070_v27, %v1064_v19  ;;  %v2071_v38 = vrot.slane %v1054_v36, 9  ;;  %v2393_v51 = vld [vmem:[%s3043_s4 + $0x30] sm:$0xff]  }
  0x64   : > { %2231 = vmatprep.subr.bf16.mxu1 %v2366_v12  ;;  %v2023_v0 = vcombine.low %v585_v61, %v595_v60  ;;  %v2082_v1 = vcombine.low %v1065_v30, %v1068_v32  ;;  %v1075_v26 = vsel %vm2800_vm4, %v1073_v39, %v1074_v40 }
  0x65   : > { %v1072_v41 = vsel %vm2800_vm4, %v2071_v38, %v1071_v33 }
  0x66   : > { %2033 = vmatmul.mubr.msk.bf16.gmra.mrb[4].mxu0 %vm701_vm0, %v2023_v0  ;;  %v2083_v43 = vcombine.low %v1072_v41, %v1075_v26  ;;  %v1411_v26 = vld [vmem:[#allocation5] sm:$0xf] }
  0x67   : > { %2232 = vmatpush3.bf16.msra.mxu1 %v2366_v12  ;;  %943 = vmatprep.mubr.bf16.mxu0 %v2446_v34  ;;  %v2384_v12 = vld [vmem:[%s3043_s4] sm:$0xff]  }
  0x68   : > { %2237 = vmatprep.subr.bf16.mxu1 %v2370_v13 }
  0x6a   : > { %2234 = vmatmul.mubr.msk.bf16.vlgmr.msra.gmra.mrb[0].mxu1 %vm701_vm0, %v2063_v2 }
  0x6b   : > { %2238 = vmatpush3.bf16.msra.mxu1 %v2370_v13  ;;  %2245 = vmatprep.mubr.msk.bf16.mxu1 %vm701_vm0, %v2102_v3 }
  0x6c   : > { %2239 = vmatprep.subr.bf16.mxu1 %v2374_v5 }
  0x6e   : > { %2060 = vmatmul.mubr.msk.bf16.vlgmr.msra.gmra.mrb[0].mxu0 %vm701_vm0, %v2050_v11 }
  0x6f   : > { %2240 = vmatpush3.bf16.msra.mxu1 %v2374_v5  ;;  %1158 = vmatpush1.bf16.msra.mxu0 %v2367_v14 }
  0x70   : > { %953 = vmatprep.mubr.bf16.mxu0 %v2446_v34  ;;  %1159 = vmatprep.subr.bf16.mxu0 %v2373_v17 }
  0x71   : > { %2241 = vmatprep.subr.bf16.mxu1 %v2379_v18 }
  0x73   : > { %2242 = vmatpush3.bf16.msra.mxu1 %v2379_v18  ;;  %1160 = vmatpush1.bf16.msra.mxu0 %v2371_v4 }
  0x74   : > { %2243 = vmatprep.subr.bf16.mxu1 %v2383_v16  ;;  %1161 = vmatprep.subr.bf16.mxu0 %v2377_v35 }
  0x76   : > { %2061 = vmatmul.mubr.msk.bf16.gmra.mrb[4].mxu0 %vm701_vm0, %v2051_v45 }
  0x77   : > { %2244 = vmatpush3.bf16.msra.mxu1 %v2383_v16  ;;  %1162 = vmatpush1.bf16.msra.mxu0 %v2375_v24 }
  0x78   : > { %1189 = vmatprep.mubr.bf16.mxu0 %v2446_v34  ;;  %1163 = vmatprep.subr.bf16.mxu0 %v2382_v28 }
  0x79   : > { %2261 = vmatprep.subr.bf16.mxu1 %v2387_v44 }
  0x7a   : > { %2246 = vmatmul.mubr.msk.bf16.vlgmr.msra.gmra.mrb[0].mxu1 %vm701_vm0, %v2103_v29 }
  0x7b   : > { %1164 = vmatpush1.bf16.msra.mxu0 %v2380_v46  ;;  %2262 = vmatpush3.bf16.msra.mxu1 %v2387_v44 }
  0x7c   : > { %2249 = vmatprep.subr.bf16.mxu0 %v2384_v12  ;;  %2263 = vmatprep.subr.bf16.mxu1 %v2390_v48 }
  0x7e   : > { %2092 = vmatmul.mubr.msk.bf16.vlgmr.msra.gmra.mrb[0].mxu0 %vm701_vm0, %v2082_v1 }
  0x7f   : > { %1199 = vmatprep.mubr.bf16.mxu0 %v2446_v34  ;;  %2250 = vmatpush3.bf16.msra.mxu0 %v2384_v12  ;;  %v2386_v34 = vld [vmem:[%s3043_s4 + $0x10] sm:$0xff]  }
  0x80   : > { %2251 = vmatprep.subr.bf16.mxu0 %v2385_v37  ;;  %2264 = vmatpush3.bf16.msra.mxu1 %v2390_v48 }
  0x81   : > { %2265 = vmatprep.subr.bf16.mxu1 %v2393_v51 }
  0x83   : > { %2252 = vmatpush3.bf16.msra.mxu0 %v2385_v37 }
  0x84   : > { %2253 = vmatprep.subr.bf16.mxu0 %v2386_v34  ;;  %2266 = vmatpush3.bf16.msra.mxu1 %v2393_v51 }
  0x85   : > { %2267 = vmatprep.subr.bf16.mxu1 %v2395_v52 }
  0x86   : > { %2093 = vmatmul.mubr.msk.bf16.gmra.mrb[4].mxu0 %vm701_vm0, %v2083_v43 }
  0x87   : > { %2254 = vmatpush3.bf16.msra.mxu0 %v2386_v34 }
  0x88   : > { %2255 = vmatprep.subr.bf16.mxu0 %v2388_v47  ;;  %2268 = vmatpush3.bf16.msra.mxu1 %v2395_v52 }
  0x8b   : > { %2256 = vmatpush3.bf16.msra.mxu0 %v2388_v47  ;;  %v1415_v47 = vld [vmem:[#allocation5 + $0x8] sm:$0x1] }
  0x8c   : > { %2273 = vmatprep.subr.bf16.mxu0 %v2902_v49 }
 0x14d   : > { %v2247_v53 = vpop.f32.mrb[0].mxu1 }
 0x14e   : > { %v1289_v58 = vpop.f32.mrb[1].mxu1 }
 0x14f   : > { %v2248_v13 = vpop.f32.mrb[2].mxu1 }
 0x150   : > { %v1292_v60 = vpop.f32.mrb[3].mxu1 }
 0x151   : > { %v1191_v61 = vpop.f32.mrb[0].mxu0 }
 0x152   : > { %v2914_v63 = vpop.f32.mrb[1].mxu0  ;;  %v1316_v0 = vadd.f32 %v1289_v58, %v1191_v61 }
 0x153   : > { %v1195_v2 = vpop.f32.mrb[2].mxu0 }
 0x154   : > { %v2916_v3 = vpop.f32.mrb[3].mxu0  ;;  %v1327_v5 = vadd.f32 %v2110_v62, %v1316_v0  ;;  %v1317_v11 = vadd.f32 %v1292_v60, %v1195_v2  ;;  %v1418_v0 = vld [vmem:[#allocation5 + $0xc] sm:$0xf] }
 0x156   : > { %v2111_v25 = vmul.f32 -1.442695, %v1327_v5  ;;  %v1328_v14 = vadd.f32 %v2110_v62, %v1317_v11 }
 0x158   : > { %2398 = vpow2.f32 %v2111_v25  ;;  %v2112_v15 = vmul.f32 -1.442695, %v1328_v14  ;;  %v1422_v14 = vld [vmem:[#allocation5 + $0x14] sm:$0x1] }
 0x159   : > { %v1201_v17 = vpop.f32.mrb[4].mxu0 }
 0x15a   : > { %2400 = vpow2.f32 %v2112_v15  ;;  %v1318_v18 = vadd.f32 %v2247_v53, %v1201_v17  ;;  %v2918_v42 = vpop.f32.mrb[5].mxu0 }
 0x15b   : > { %v1205_v31 = vpop.f32.mrb[6].mxu0 }
 0x15c   : > { %v1329_v9 = vadd.f32 %v2110_v62, %v1318_v18  ;;  %v1319_v19 = vadd.f32 %v2248_v13, %v1205_v31  ;;  %v2920_v4 = vpop.f32.mrb[7].mxu0 }
 0x15e   : > { %v2113_v16 = vmul.f32 -1.442695, %v1329_v9  ;;  %v1330_v35 = vadd.f32 %v2110_v62, %v1319_v19 }
 0x160   : > { %2402 = vpow2.f32 %v2113_v16  ;;  %v2114_v20 = vmul.f32 -1.442695, %v1330_v35 }
 0x162   : > { %v2399_v45 = vpop.eup %2398  ;;  %2404 = vpow2.f32 %v2114_v20 }
 0x163   : > { %v1343_v21 = vadd.f32 1.0, %v2399_v45 }
 0x164   : > { %v2401_v22 = vpop.eup %2400 }
 0x165   : > { %2406 = vrcp.f32 %v1343_v21  ;;  %v1344_v23 = vadd.f32 1.0, %v2401_v22 }
 0x167   : > { %2408 = vrcp.f32 %v1344_v23 }
 0x16a   : > { %v2403_v24 = vpop.eup %2402 }
 0x16b   : > { %v1345_v27 = vadd.f32 1.0, %v2403_v24 }
 0x16c   : > { %v2405_v8 = vpop.eup %2404 }
 0x16d   : > { %2410 = vrcp.f32 %v1345_v27  ;;  %v1346_v28 = vadd.f32 1.0, %v2405_v8 }
 0x16f   : > { %v2922_v29 = vpop.eup %2406  ;;  %2412 = vrcp.f32 %v1346_v28 }
 0x170   : > { %v1355_v46 = vmul.f32 %v2922_v29, %v2623_v55 }
 0x171   : > { %v2926_v30 = vpop.eup %2408 }
 0x172   : > { %v2172_v32 = vpack.c.bf16 %v1355_v46, %v1355_v46  ;;  %v1356_v33 = vmul.f32 %v2926_v30, %v2625_v56 }
 0x174   : > { %v1372_v36 = vshrl.u32 %v2172_v32, 16  ;;  %v2173_v1 = vpack.c.bf16 %v1356_v33, %v1356_v33  ;;  %v1375_v39 = vshll.u32 %v2172_v32, 16 }
 0x176   : > { %v1374_v38 = vrot.slane %v1372_v36, 7  ;;  %v1380_v40 = vshrl.u32 %v2173_v1, 16  ;;  %v1383_v37 = vshll.u32 %v2173_v1, 16 }
 0x177   : > { %v2930_v41 = vpop.eup %2410 }
 0x178   : > { %v1377_v43 = vor.u32 %v1375_v39, %v1374_v38  ;;  %v1382_v12 = vrot.slane %v1380_v40, 7  ;;  %v1357_v55 = vmul.f32 %v2930_v41, %v2644_v6  ;;  %v1378_v44 = vrot.slane %v1374_v38, 4 }
 0x179   : > { %v2934_v34 = vpop.eup %2412 }
 0x17a   : > { %v1412_v56 = vsel %vm2619_vm12, %v1377_v43, %v1411_v26  ;;  %v1385_v48 = vor.u32 %v1383_v37, %v1382_v12  ;;  %v1387_v51 = vrot.slane %v1382_v12, 4  ;;  %v2174_v52 = vpack.c.bf16 %v1357_v55, %v1357_v55  ;;  %v2394_v55 = vld [vmem:[%s3043_s4 + $0x48] sm:$0xff]  }
 0x17b   : > { %1413 = vst [vmem:[#allocation5] sm:$0xf] %v1412_v56  ;;  %v1358_v53 = vmul.f32 %v2934_v34, %v2646_v7 }
 0x17c   : > { %v1386_v58 = vsel %vm2614_vm11, %v1378_v44, %v1385_v48  ;;  %v1416_v6 = vsel %vm2629_vm13, %v1387_v51, %v1415_v47  ;;  %v1389_v13 = vshrl.u32 %v2174_v52, 16  ;;  %v1392_v62 = vshll.u32 %v2174_v52, 16 }
 0x17d   : > { %1417 = vst [vmem:[#allocation5 + $0x8] sm:$0x1] %v1416_v6  ;;  %1414 = vst.msk [vmem:[#allocation5 + $0x4] sm:$0xf] %vm433_vm6, %v1386_v58  ;;  %v2175_v60 = vpack.c.bf16 %v1358_v53, %v1358_v53 }
 0x17e   : > { %v1391_v61 = vrot.slane %v1389_v13, 7 }
 0x17f   : > { %v1397_v2 = vshrl.u32 %v2175_v60, 16  ;;  %v1400_v25 = vshll.u32 %v2175_v60, 16 }
 0x180   : > { %v1394_v5 = vor.u32 %v1392_v62, %v1391_v61  ;;  %v1395_v17 = vrot.slane %v1391_v61, 4 }
 0x181   : > { %v1399_v11 = vrot.slane %v1397_v2, 7 }
 0x182   : > { %v1419_v7 = vsel %vm2619_vm12, %v1394_v5, %v1418_v0  ;;  %v1541_v15 = vld [vmem:[#allocation5] sm:$0xf] }
 0x183   : > { %1420 = vst [vmem:[#allocation5 + $0xc] sm:$0xf] %v1419_v7  ;;  %v1402_v18 = vor.u32 %v1400_v25, %v1399_v11  ;;  %v1404_v31 = vrot.slane %v1399_v11, 4  ;;  %v1548_v9 = vshrl.u32 %v1541_v15, 16  ;;  %v1551_v35 = vshll.u32 %v1541_v15, 16  ;;  %v2396_v11 = vld [vmem:[%s3043_s4 + $0x50] sm:$0xff]  }
 0x184   : > { %v2389_v19 = vld [vmem:[#allocation5] sm:$0xff]   ;;  %v1543_v21 = vld [vmem:[#allocation5 + $0x8] sm:$0x1] }
 0x185   : > { %v1542_v16 = vld [vmem:[#allocation5 + $0x4] sm:$0xf]  ;;  %v1403_v20 = vsel %vm2614_vm11, %v1395_v17, %v1402_v18  ;;  %v1423_v45 = vsel %vm2629_vm13, %v1404_v31, %v1422_v14  ;;  %v1550_v54 = vrot.slane %v1548_v9, 4  ;;  %2257 = vmatprep.mubr.msk.bf16.mxu0 %vm701_vm0, %v2389_v19  ;;  %v1693_v23 = vld [vmem:[#allocation5] sm:$0xe]  ;;  %v1553_v24 = vrot.slane %v1551_v35, 5 }
 0x186   : > { %v1703_v22 = vrot.slane %v1542_v16, 5  ;;  %1421 = vst.msk [vmem:[#allocation5 + $0x10] sm:$0xf] %vm433_vm6, %v1403_v20  ;;  %1424 = vst [vmem:[#allocation5 + $0x14] sm:$0x1] %v1423_v45  ;;  %v1557_v27 = vshll.u32 %v1542_v16, 16 }
 0x187   : > { %v1561_v8 = vshrl.u32 %v1542_v16, 16  ;;  %v1706_v46 = vrot.slane %v1543_v21, 5  ;;  %v1554_v32 = vor.u32 %v1553_v24, %v1550_v54  ;;  %v1567_v36 = vshll.u32 %v1543_v21, 16 }
 0x188   : > { %v1705_v28 = vrot.slane %v1703_v22, 4  ;;  %v1559_v50 = vrot.slane %v1557_v27, 5  ;;  %v2144_v59 = vrot.slane %v1693_v23, 9  ;;  %v1434_v54 = vadd.f32 %v2119_v10, %v2918_v42 }
 0x189   : > { %v1563_v33 = vrot.slane %v1561_v8, 4  ;;  %v1555_v38 = vrot.slane %v1554_v32, 4  ;;  %v1569_v47 = vrot.slane %v1567_v36, 5  ;;  %v1432_v23 = vadd.f32 %v2119_v10, %v2914_v63 }
 0x18a   : > { %v1707_v1 = vsel %vm2800_vm4, %v1705_v28, %v1706_v46  ;;  %v1544_v40 = vld [vmem:[#allocation5 + $0xc] sm:$0xf]  ;;  %v1704_v26 = vsel %vm2800_vm4, %v2144_v59, %v1703_v22  ;;  %v1435_v27 = vadd.f32 %v2119_v10, %v2920_v4  ;;  %v1433_v46 = vadd.f32 %v2119_v10, %v2916_v3 }
 0x18b   : > { %v1564_v39 = vor.u32 %v1563_v33, %v1559_v50  ;;  %v1572_v43 = vshrl.u32 %v1544_v40, 16  ;;  %v1575_v12 = vshll.u32 %v1544_v40, 16  ;;  %v2154_v37 = vcombine.low %v1704_v26, %v1707_v1  ;;  %v1694_v16 = vld [vmem:[#allocation5 + $0xc] sm:$0xe] }
 0x18c   : > { %v1560_v48 = vsel %vm2699_vm1, %v1555_v38, %v1559_v50  ;;  %v2145_v20 = vrot.slane %v1694_v16, 9 }
 0x18d   : > { %v1565_v44 = vrot.slane %v1564_v39, 4  ;;  %v2392_v56 = vld [vmem:[#allocation5 + $0xc] sm:$0xff]   ;;  %v1574_v52 = vrot.slane %v1572_v43, 4  ;;  %v1546_v58 = vld [vmem:[#allocation5 + $0x14] sm:$0x1]  ;;  %v1577_v6 = vrot.slane %v1575_v12, 5 }
 0x18e   : > { %v1545_v51 = vld [vmem:[#allocation5 + $0x10] sm:$0xf]  ;;  %2258 = vmatmul.mubr.msk.bf16.vlgmr.msra.gmra.mrb[8].mxu0 %vm701_vm0, %v2392_v56  ;;  %v1591_v5 = vshll.u32 %v1546_v58, 16  ;;  %v1713_v35 = vrot.slane %v1546_v58, 5  ;;  %v1830_v58 = vpop.permute.xlu1 %1829 }
 0x18f   : > { %v1570_v53 = vsel %vm2699_vm1, %v1565_v44, %v1569_v47  ;;  %v1581_v13 = vshll.u32 %v1545_v51, 16  ;;  %v1585_v60 = vshrl.u32 %v1545_v51, 16  ;;  %2274 = vmatpush3.bf16.msra.mxu0 %v2902_v49  ;;  %2281 = vmatprep.mubr.msk.bf16.mxu0 %vm701_vm0, %v2154_v37  ;;  %v1578_v62 = vor.u32 %v1577_v6, %v1574_v52  ;;  %v2397_v49 = vld [vmem:[%s3043_s4 + $0x58] sm:$0xff]  }
 0x190   : > { %v2136_v61 = vcombine.low %v1560_v48, %v1570_v53  ;;  %2275 = vmatprep.subr.bf16.mxu0 %v2394_v55  ;;  %v1710_v14 = vrot.slane %v1545_v51, 5  ;;  %v1593_v17 = vrot.slane %v1591_v5, 5  ;;  %v1826_v53 = vpop.permute.xlu0 %1825 }
 0x191   : > { %v1583_v0 = vrot.slane %v1581_v13, 5  ;;  %v1587_v2 = vrot.slane %v1585_v60, 4  ;;  %v1579_v25 = vrot.slane %v1578_v62, 4  ;;  %v1817_v13 = vsub.f32 1.0, %v2922_v29 }
 0x192   : > { %2269 = vmatprep.mubr.msk.bf16.mxu1 %vm701_vm0, %v2136_v61  ;;  %v1712_v9 = vrot.slane %v1710_v14, 4  ;;  %v1711_v21 = vsel %vm2800_vm4, %v2145_v20, %v1710_v14  ;;  %v1832_v60 = vpop.permute.xlu1 %1831  ;;  %v1818_v61 = vsub.f32 1.0, %v2926_v30 }
 0x193   : > { %v1588_v7 = vor.u32 %v1587_v2, %v1583_v0  ;;  %2276 = vmatpush3.bf16.msra.mxu0 %v2394_v55  ;;  %v1584_v18 = vsel %vm2699_vm1, %v1579_v25, %v1583_v0  ;;  %v1837_v0 = vmul.f32 %v1826_v53, %v1817_v13  ;;  %v1819_v2 = vsub.f32 1.0, %v2930_v41 }
 0x194   : > { %2277 = vmatprep.subr.bf16.mxu0 %v2396_v11  ;;  %v1714_v45 = vsel %vm2800_vm4, %v1712_v9, %v1713_v35  ;;  %v1828_v6 = vpop.permute.xlu0 %1827 }
 0x195   : > { %v1589_v15 = vrot.slane %v1588_v7, 4  ;;  %v2155_v22 = vcombine.low %v1711_v21, %v1714_v45  ;;  %v1838_v25 = vmul.f32 %v1828_v6, %v1818_v61  ;;  %v1820_v7 = vsub.f32 1.0, %v2934_v34 }
 0x197   : > { %v1594_v31 = vsel %vm2699_vm1, %v1589_v15, %v1593_v17  ;;  %2278 = vmatpush3.bf16.msra.mxu0 %v2396_v11 }
 0x198   : > { %v2137_v19 = vcombine.low %v1584_v18, %v1594_v31  ;;  %2279 = vmatprep.subr.bf16.mxu0 %v2397_v49 }
 0x19a   : > { %2270 = vmatmul.mubr.msk.bf16.vlgmr.msra.gmra.mrb[4].mxu1 %vm701_vm0, %v2137_v19  ;;  %v1840_v19 = vmul.f32 %v1832_v60, %v1820_v7 }
 0x19b   : > { %2280 = vmatpush3.bf16.msra.mxu0 %v2397_v49  ;;  %v1839_v49 = vmul.f32 %v1830_v58, %v1819_v2 }
 0x19e   : > { %2282 = vmatmul.mubr.msk.bf16.vlgmr.msra.gmra.mrb[12].mxu0 %vm701_vm0, %v2155_v22 }
 0x261   : > { %v2259_v24 = vpop.f32.mrb[8].mxu0 }
 0x262   : > { %v1539_v8 = vadd.f32 %v2259_v24, %v1434_v54  ;;  %v1522_v28 = vpop.f32.mrb[9].mxu0 }
 0x263   : > { %v1537_v57 = vadd.f32 %v1522_v28, %v1432_v23  ;;  %v2260_v32 = vpop.f32.mrb[10].mxu0 }
 0x264   : > { %v1540_v50 = vadd.f32 %v2260_v32, %v1435_v27  ;;  %v1525_v33 = vpop.f32.mrb[11].mxu0 }
 0x265   : > { %v1538_v36 = vadd.f32 %v1525_v33, %v1433_v46 }
 0x26d   : > { %v2271_v59 = vpop.f32.mrb[4].mxu1 }
 0x26e   : > { %v1691_v1 = vadd.f32 %v2271_v59, %v1539_v8  ;;  %v1674_v38 = vpop.f32.mrb[5].mxu1 }
 0x26f   : > { %v1689_v39 = vadd.f32 %v1674_v38, %v1537_v57  ;;  %v2272_v40 = vpop.f32.mrb[6].mxu1 }
 0x270   : > { %v1692_v42 = vadd.f32 %v2272_v40, %v1540_v50  ;;  %v1677_v26 = vpop.f32.mrb[7].mxu1 }
 0x271   : > { %v1690_v63 = vadd.f32 %v1677_v26, %v1538_v36  ;;  %v2283_v43 = vpop.f32.mrb[12].mxu0 }
 0x272   : > { %v1811_v12 = vadd.f32 %v2283_v43, %v1691_v1  ;;  %v1794_v4 = vpop.f32.mrb[13].mxu0 }
 0x273   : > { %v1809_v37 = vadd.f32 %v1794_v4, %v1689_v39  ;;  %v2284_v55 = vpop.f32.mrb[14].mxu0 }
 0x274   : > { %v1812_v44 = vadd.f32 %v2284_v55, %v1692_v42  ;;  %v1797_v3 = vpop.f32.mrb[15].mxu0 }
 0x275   : > { %2414 = vtanh.f32 %v1809_v37  ;;  %v1810_v47 = vadd.f32 %v1797_v3, %v1690_v63 }
 0x277   : > { %2416 = vtanh.f32 %v1810_v47 }
 0x278   : > { %2418 = vtanh.f32 %v1811_v12 }
 0x279   : > { %2420 = vtanh.f32 %v1812_v44 }
 0x27f   : > { %v2415_v56 = vpop.eup %2414 }
 0x280   : > { %1845 = vrot.lane.b32.xlu0 %v2415_v56, %s2447_s29 }
 0x281   : > { %v2417_v48 = vpop.eup %2416 }
 0x282   : > { %1847 = vrot.lane.b32.xlu1 %v2417_v48, %s2447_s29  ;;  %v2419_v51 = vpop.eup %2418 }
 0x283   : > { %v2421_v52 = vpop.eup %2420 }
 0x284   : > { %1849 = vrot.lane.b32.xlu0 %v2419_v51, %s2447_s29 }
 0x286   : > { %1851 = vrot.lane.b32.xlu1 %v2421_v52, %s2447_s29 }
 0x2f2   : > { %v1846_v62 = vpop.permute.xlu0 %1845 }
 0x2f3   : > { %v1857_v5 = vmul.f32 %v2922_v29, %v1846_v62 }
 0x2f4   : > { %v1848_v11 = vpop.permute.xlu1 %1847 }
 0x2f5   : > { %v1861_v14 = vadd.f32 %v1857_v5, %v1837_v0  ;;  %v1858_v15 = vmul.f32 %v2926_v30, %v1848_v11 }
 0x2f6   : > { %v1850_v17 = vpop.permute.xlu0 %1849 }
 0x2f7   : > { %v1862_v18 = vadd.f32 %v1858_v15, %v1838_v25  ;;  %v1859_v31 = vmul.f32 %v2930_v41, %v1850_v17  ;;  %1869 = vrot.lane.b32.xlu0 %v1861_v14, %s2447_s29 }
 0x2f8   : > { %v1852_v9 = vpop.permute.xlu1 %1851 }
 0x2f9   : > { %v1863_v29 = vadd.f32 %v1859_v31, %v1839_v49  ;;  %v1860_v16 = vmul.f32 %v2934_v34, %v1852_v9  ;;  %1871 = vrot.lane.b32.xlu1 %v1862_v18, %s2447_s29 }
 0x2fb   : > { %v1864_v35 = vadd.f32 %v1860_v16, %v1840_v19  ;;  %1873 = vrot.lane.b32.xlu0 %v1863_v29, %s2447_s29 }
 0x2fd   : > { %1875 = vrot.lane.b32.xlu1 %v1864_v35, %s2447_s29  ;;  %s2176_s29 = sshll.u32 (%p2513_p5), %s2501_s27, 4 }
 0x2fe   : > { %s1898_s18 = scalar_lea.vmem (%p2513_p5), %s3046_s7, %s2176_s29 }
 0x369   : > { %v1870_v30 = vpop.permute.xlu0 %1869 }
 0x36a   : > { %1881 = vst.msk [vmem:[#allocation2] sm:$0xff] %vm701_vm0, %v1870_v30  ;;  %1885 = vst.msk [vmem:[%s2524_s21] sm:$0xff] %vm701_vm0, %v1870_v30  ;;  %1895 = sbr.rel (!%p2513_p5) target bundleno = 889 (0x379), region = 97 }
 0x36b   : > { %v1872_v41 = vpop.permute.xlu1 %1871 }
 0x36c   : > { %1882 = vst.msk [vmem:[#allocation2 + $0x8] sm:$0xff] %vm701_vm0, %v1872_v41  ;;  %1886 = vst.msk [vmem:[%s2524_s21 + $0x8] sm:$0xff] %vm701_vm0, %v1872_v41 }
 0x36d   : > { %v1874_v20 = vpop.permute.xlu0 %1873 }
 0x36e   : > { %1883 = vst.msk [vmem:[#allocation2 + $0x10] sm:$0xff] %vm701_vm0, %v1874_v20  ;;  %1887 = vst.msk [vmem:[%s2524_s21 + $0x10] sm:$0xff] %vm701_vm0, %v1874_v20 }
 0x36f   : > { %v1876_v34 = vpop.permute.xlu1 %1875 }
 0x370   : > { %1884 = vst.msk [vmem:[#allocation2 + $0x18] sm:$0xff] %vm701_vm0, %v1876_v34  ;;  %1888 = vst.msk [vmem:[%s2524_s21 + $0x18] sm:$0xff] %vm701_vm0, %v1876_v34 }
 0x371   : > { %v1932_v45 = vld [vmem:[%s2524_s21] sm:$0xff] }
 0x372   : > { %1933 = vst [vmem:[%s1898_s18] sm:$0xff] %v1932_v45 }
 0x373   : > { %v1934_v21 = vld [vmem:[%s2524_s21 + $0x8] sm:$0xff] }
 0x374   : > { %1935 = vst [vmem:[%s1898_s18 + $0x8] sm:$0xff] %v1934_v21 }
 0x375   : > { %v1936_v22 = vld [vmem:[%s2524_s21 + $0x10] sm:$0xff] }
 0x376   : > { %1937 = vst [vmem:[%s1898_s18 + $0x30] sm:$0xff] %v1936_v22 }
 0x377   : > { %v1938_v10 = vld [vmem:[%s2524_s21 + $0x18] sm:$0xff] }
 0x378   : > { %1939 = vst [vmem:[%s1898_s18 + $0x38] sm:$0xff] %v1938_v10 }
 0x379 PF: > { %p14_p11 = scmp.ge.s32.totalorder %s2503_s28, 5   ;;  %s3062_s24 = smov %s2440_s25 }
 0x37a   : > { %s3063_s25 = smov %s2511_s8  ;;  %s3064_s26 = smov %s2503_s28 }
 0x37b   :  { %16 = sbr.rel (!%p14_p11) target bundleno = 2 (0x2), region = 172 }

</bundles_post_ra>
